<compile_context>
chip_gen: v7x
topology: tpu7x:2x2x1
jax: 0.10.0
libtpu: 0.0.40
codegen_flags: <defaults>
</compile_context>

<pallas_src>
import jax
import jax.numpy as jnp
from jax import lax
from jax.experimental import pallas as pl
from jax.experimental.pallas import tpu as pltpu

LANE = 128
N_DET = 128  # padded candidate count per image (demo)


def _round_up(x, m):
    return ((x + m - 1) // m) * m


def _pick_batch_block(b):
    """Batch-block size: fatter blocks on 128 MiB-VMEM parts (v5e/v6e),
    conservative on v7x (64 MiB), and always >= 2 batch blocks when b > 1 so
    v7x's two TensorCores both get work on the 'parallel' axis."""
    cap = 8
    try:
        vmem = pltpu.get_tpu_info().vmem_capacity_bytes
        if vmem >= 100 * 1024 * 1024:   # v5e / v6e: 128 MiB VMEM
            cap = 16
    except Exception:
        pass                            # unknown part / interpret: stay conservative
    if b <= 1:
        return 1
    if b <= 2 * cap:
        return (b + 1) // 2             # guarantees >= 2 batch blocks
    return cap


def _transpose_minor(x):
    """[bblk, r, t] -> [bblk, t, r] via per-batch 2-D XLU transposes (bblk is a
    small static constant), avoiding reliance on rank-3 transpose lowering."""
    b = x.shape[0]
    if b == 1:
        return jnp.transpose(x[0], (1, 0))[None]
    return jnp.stack([jnp.transpose(x[i], (1, 0)) for i in range(b)], axis=0)


# ----------------------------------------------------------------------------
# Pallas kernel: fused lane-dense decode + tiled class-masked pairwise IoU
# with a running-max accumulator over patch tiles and in-kernel partial sums.
# ----------------------------------------------------------------------------
def _make_iou_kernel(conf_threshold, patch_conf, num_classes, bblk, tile_n):
    def _decode(rows):
        # rows: [bblk, 5+nc, T] coordinate-major (lane-dense row slices).
        cx = rows[:, 0:1, :]
        cy = rows[:, 1:2, :]
        w = rows[:, 2:3, :]
        h = rows[:, 3:4, :]
        obj = rows[:, 4:5, :]
        scores = obj * rows[:, 5:, :]                              # [bblk, nc, T]
        conf = jnp.max(scores, axis=1, keepdims=True)              # [bblk, 1, T]
        iota = lax.broadcasted_iota(jnp.int32, scores.shape, 1)
        # argmax with first-index tie rule (min index attaining the max)
        cls = jnp.min(jnp.where(scores == conf, iota, num_classes),
                      axis=1, keepdims=True).astype(jnp.float32)   # [bblk, 1, T]
        x1 = cx - w * 0.5
        y1 = cy - h * 0.5
        x2 = cx + w * 0.5
        y2 = cy + h * 0.5
        area = (x2 - x1) * (y2 - y1)
        return x1, y1, x2, y2, area, cls, conf

    def _fold_to_lane(x):
        # [bblk, tile_n] -> [bblk, LANE] partial (no-op when tile_n == LANE).
        if tile_n == LANE:
            return x
        return jnp.sum(x.reshape(bblk, tile_n // LANE, LANE), axis=1)

    def kernel(clean_ref, patch_ref, sum_ref, cnt_ref, mx_ref):
        ci = pl.program_id(1)               # clean tile
        pi = pl.program_id(2)               # patch tile (reduction axis, last)

        @pl.when((ci == 0) & (pi == 0))
        def _():                            # fresh batch block: zero partial sums
            sum_ref[...] = jnp.zeros_like(sum_ref)
            cnt_ref[...] = jnp.zeros_like(cnt_ref)

        @pl.when(pi == 0)
        def _():                            # fresh clean tile: reset running max
            mx_ref[...] = jnp.zeros_like(mx_ref)

        # ---- clean side: lane-dense rows [bblk, 1, Tc] ----------------------
        # (recomputed per patch tile; cheap and lane-dense vs. the [Tp,Tc] stage)
        cx1, cy1, cx2, cy2, carea, ccls, cconf = _decode(clean_ref[...])
        cvalid = (cconf > conf_threshold).astype(jnp.float32)      # [bblk, 1, Tc]

        # ---- patch side: lane-dense decode + one small XLU transpose --------
        px1, py1, px2, py2, parea, pcls, pconf = _decode(patch_ref[...])
        pvalid = (pconf > patch_conf).astype(jnp.float32)          # [bblk, 1, Tp]
        slab = jnp.concatenate(
            [px1, py1, px2, py2, parea, pcls, pvalid, jnp.zeros_like(px1)],
            axis=1)                                                # [bblk, 8, Tp]
        cols = _transpose_minor(slab)                              # [bblk, Tp, 8]
        px1c = cols[:, :, 0:1]
        py1c = cols[:, :, 1:2]
        px2c = cols[:, :, 2:3]
        py2c = cols[:, :, 3:4]
        pareac = cols[:, :, 4:5]
        pclsc = cols[:, :, 5:6]
        pvalidc = cols[:, :, 6:7]

        # ---- pairwise IoU tile [bblk, Tp, Tc] --------------------------------
        iw = jnp.maximum(jnp.minimum(px2c, cx2) - jnp.maximum(px1c, cx1), 0.0)
        ih = jnp.maximum(jnp.minimum(py2c, cy2) - jnp.maximum(py1c, cy1), 0.0)
        inter = iw * ih
        union = pareac + carea - inter
        # approx reciprocal rides the EUP slot (kernel is VALU-bound); eps
        # guard avoids the union == 0 NaN hazard.
        iou = inter * pl.reciprocal(jnp.maximum(union, 1e-12), approx=True)
        # Same-class, confidence-valid patch detections only.
        masked = jnp.where((pclsc == ccls) & (pvalidc > 0.5), iou, 0.0)

        # Running max over patch tiles (empty match set -> 0, since IoU >= 0).
        tile_max = jnp.max(masked, axis=1)                         # [bblk, Tc]
        mx_ref[...] = jnp.maximum(mx_ref[...], tile_max)

        # ---- last patch tile: mask by clean validity, accumulate partials ---
        @pl.when(pi == pl.num_programs(2) - 1)
        def _():
            cval = cvalid[:, 0, :]                                 # [bblk, Tc]
            best = mx_ref[...] * cval                              # [bblk, Tc]
            sum_ref[...] += _fold_to_lane(best)[None]
            cnt_ref[...] += _fold_to_lane(cval)[None]

    return kernel


def iou_loss(output_clean, output_patch, conf_threshold,
             patch_conf=0.001, tile_n=LANE):
    """Loss = 1 - mean over clean detections of (max same-class patch IoU)."""
    output_clean = jnp.asarray(output_clean, jnp.float32)
    output_patch = jnp.asarray(output_patch, jnp.float32)
    b, n, c = output_clean.shape
    assert output_patch.shape == (b, n, c)
    assert tile_n % LANE == 0
    num_classes = c - 5

    bblk = _pick_batch_block(b)
    b_pad = _round_up(b, bblk)
    n_pad = _round_up(n, tile_n)

    # Zero-padded rows decode to obj=0 -> invalid on both sides -> contribute 0.
    def prep(x):
        if b_pad != b or n_pad != n:          # skip the pad pass when aligned
            x = jnp.pad(x, ((0, b_pad - b), (0, n_pad - n), (0, 0)))
        return jnp.transpose(x, (0, 2, 1))    # coordinate-major [B, 5+nc, N]

    clean_t = prep(output_clean)
    patch_t = prep(output_patch)

    nblk_b = b_pad // bblk
    nblk_n = n_pad // tile_n

    kernel = _make_iou_kernel(conf_threshold, patch_conf, num_classes,
                              bblk, tile_n)

    sums, cnts = pl.pallas_call(
        kernel,
        out_shape=(
            jax.ShapeDtypeStruct((nblk_b, bblk, LANE), jnp.float32),
            jax.ShapeDtypeStruct((nblk_b, bblk, LANE), jnp.float32),
        ),
        grid=(nblk_b, nblk_n, nblk_n),
        in_specs=[
            # clean: resident across the patch axis (no re-DMA per patch tile)
            pl.BlockSpec((bblk, c, tile_n), lambda bi, ci, pi: (bi, 0, ci)),
            pl.BlockSpec((bblk, c, tile_n), lambda bi, ci, pi: (bi, 0, pi)),
        ],
        out_specs=(
            pl.BlockSpec((1, bblk, LANE), lambda bi, ci, pi: (bi, 0, 0)),
            pl.BlockSpec((1, bblk, LANE), lambda bi, ci, pi: (bi, 0, 0)),
        ),
        scratch_shapes=[pltpu.VMEM((bblk, tile_n), jnp.float32)],  # running max
        compiler_params=pltpu.CompilerParams(
            # batch blocks shard across v7x TensorCores; clean/patch tiles are
            # accumulation axes for the resident outputs / max scratch.
            dimension_semantics=("parallel", "arbitrary", "arbitrary")),
    )(clean_t, patch_t)

    # Final tiny scalar reduction stays in JAX.
    num = jnp.sum(sums)
    den = jnp.sum(cnts)
    one = jnp.float32(1.0)
    return jnp.where(den > 0, one - num / jnp.maximum(den, 1.0), one)


class IoUPallas:
    def __init__(self, conf_threshold, iou_threshold, img_size):
        self.conf_threshold = float(conf_threshold)
        # iou_threshold kept for parity; greedy NMS suppression is not applied.
        self.iou_threshold = float(iou_threshold)
        # img_size kept for parity; the reference divides both box sets by
        # gn = img_size[[1,0,1,0]], which cancels exactly in IoU.
        self.img_size = img_size

    def __call__(self, output_clean, output_patch):
        return iou_loss(output_clean, output_patch, self.conf_threshold)


# ----------------------------------------------------------------------------
# Demo
# ----------------------------------------------------------------------------
if __name__ == "__main__":
    bs, n, nc = 2, N_DET, 3
    img_size = (640, 640)

    def make_output(key):
        kx, kw, ko, kc = jax.random.split(key, 4)
        xy = jax.random.uniform(kx, (bs, n, 2), minval=0.0, maxval=float(img_size[0]))
        wh = jax.random.uniform(kw, (bs, n, 2), minval=8.0, maxval=float(img_size[0]) / 2)
        obj = jax.random.uniform(ko, (bs, n, 1), minval=0.0, maxval=1.0)
        cls = jax.random.uniform(kc, (bs, n, nc), minval=0.0, maxval=1.0)
        return jnp.concatenate([xy, wh, obj, cls], axis=-1).astype(jnp.float32)

    key = jax.random.PRNGKey(0)
    k_clean, k_noise = jax.random.split(key)
    output_clean = make_output(k_clean)
    # Patched output: clean output perturbed (mimics adversarial patch effect).
    output_patch = output_clean + 0.05 * jax.random.normal(
        k_noise, output_clean.shape, dtype=jnp.float32
    )

    model = IoUPallas(conf_threshold=0.25, iou_threshold=0.45, img_size=img_size)
    loss = jax.block_until_ready(model(output_clean, output_patch))
    assert loss.shape == () and jnp.isfinite(loss)
    print("KERNEL_OK")
</pallas_src>

<mosaic_0001>
module attributes {stable_mosaic.version = 11 : i64} {
  func.func @kernel(%arg0: i32, %arg1: i32, %arg2: i32, %arg3: memref<1x8x128xf32, #tpu.memory_space<vmem>>, %arg4: memref<1x8x128xf32, #tpu.memory_space<vmem>>, %arg5: memref<1x1x128xf32, #tpu.memory_space<vmem>>, %arg6: memref<1x1x128xf32, #tpu.memory_space<vmem>>, %arg7: memref<1x128xf32, #tpu.memory_space<vmem>>) attributes {dimension_semantics = [#tpu.dimension_semantics<parallel>, #tpu.dimension_semantics<arbitrary>, #tpu.dimension_semantics<arbitrary>], iteration_bounds = array<i64: 2, 1, 1>, scalar_prefetch = 0 : i64, scratch_operands = 1 : i64, tpu.core_type = #tpu.core_type<tc>, window_params = [{transform_indices = @transform_0, window_bounds = array<i64: 1, 8, 128>}, {transform_indices = @transform_1, window_bounds = array<i64: 1, 8, 128>}, {transform_indices = @transform_2, window_bounds = array<i64: 1, 1, 128>}, {transform_indices = @transform_3, window_bounds = array<i64: 1, 1, 128>}]} {
    %c0_i32 = arith.constant 0 : i32
    %0 = arith.cmpi eq, %arg1, %c0_i32 : i32
    %c0_i32_0 = arith.constant 0 : i32
    %1 = arith.cmpi eq, %arg2, %c0_i32_0 : i32
    %2 = arith.andi %0, %1 : i1
    %3 = arith.extui %2 : i1 to i32
    %c0_i32_1 = arith.constant 0 : i32
    %4 = arith.cmpi ne, %3, %c0_i32_1 : i32
    scf.if %4 {
      %cst_36 = arith.constant 0.000000e+00 : f32
      %139 = vector.broadcast %cst_36 : f32 to vector<1x1x128xf32>
      %c0_37 = arith.constant 0 : index
      %c0_38 = arith.constant 0 : index
      %c0_39 = arith.constant 0 : index
      %140 = vector.load %arg5[%c0_37, %c0_38, %c0_39] : memref<1x1x128xf32, #tpu.memory_space<vmem>>, vector<1x1x128xf32>
      tpu.vector_store %arg5[%c0_37, %c0_38, %c0_39], %139 {strides = array<i32>} : memref<1x1x128xf32, #tpu.memory_space<vmem>>, vector<1x1x128xf32>,
      %cst_40 = arith.constant 0.000000e+00 : f32
      %141 = vector.broadcast %cst_40 : f32 to vector<1x1x128xf32>
      %c0_41 = arith.constant 0 : index
      %c0_42 = arith.constant 0 : index
      %c0_43 = arith.constant 0 : index
      %142 = vector.load %arg6[%c0_41, %c0_42, %c0_43] : memref<1x1x128xf32, #tpu.memory_space<vmem>>, vector<1x1x128xf32>
      tpu.vector_store %arg6[%c0_41, %c0_42, %c0_43], %141 {strides = array<i32>} : memref<1x1x128xf32, #tpu.memory_space<vmem>>, vector<1x1x128xf32>,
    } else {
    }
    %c0_i32_2 = arith.constant 0 : i32
    %5 = arith.cmpi eq, %arg2, %c0_i32_2 : i32
    %6 = arith.extui %5 : i1 to i32
    %c0_i32_3 = arith.constant 0 : i32
    %7 = arith.cmpi ne, %6, %c0_i32_3 : i32
    scf.if %7 {
      %cst_36 = arith.constant 0.000000e+00 : f32
      %139 = vector.broadcast %cst_36 : f32 to vector<1x128xf32>
      %c0_37 = arith.constant 0 : index
      %c0_38 = arith.constant 0 : index
      %140 = vector.load %arg7[%c0_37, %c0_38] : memref<1x128xf32, #tpu.memory_space<vmem>>, vector<1x128xf32>
      tpu.vector_store %arg7[%c0_37, %c0_38], %139 {strides = array<i32>} : memref<1x128xf32, #tpu.memory_space<vmem>>, vector<1x128xf32>,
    } else {
    }
    %c0 = arith.constant 0 : index
    %c0_4 = arith.constant 0 : index
    %c0_5 = arith.constant 0 : index
    %8 = vector.load %arg3[%c0, %c0_4, %c0_5] : memref<1x8x128xf32, #tpu.memory_space<vmem>>, vector<1x8x128xf32>
    %9 = vector.extract_strided_slice %8 {offsets = [0, 0, 0], sizes = [1, 1, 128], strides = [1, 1, 1]} : vector<1x8x128xf32> to vector<1x1x128xf32>
    %10 = vector.extract_strided_slice %8 {offsets = [0, 1, 0], sizes = [1, 1, 128], strides = [1, 1, 1]} : vector<1x8x128xf32> to vector<1x1x128xf32>
    %11 = vector.extract_strided_slice %8 {offsets = [0, 2, 0], sizes = [1, 1, 128], strides = [1, 1, 1]} : vector<1x8x128xf32> to vector<1x1x128xf32>
    %12 = vector.extract_strided_slice %8 {offsets = [0, 3, 0], sizes = [1, 1, 128], strides = [1, 1, 1]} : vector<1x8x128xf32> to vector<1x1x128xf32>
    %13 = vector.extract_strided_slice %8 {offsets = [0, 4, 0], sizes = [1, 1, 128], strides = [1, 1, 1]} : vector<1x8x128xf32> to vector<1x1x128xf32>
    %14 = vector.extract_strided_slice %8 {offsets = [0, 5, 0], sizes = [1, 3, 128], strides = [1, 1, 1]} : vector<1x8x128xf32> to vector<1x3x128xf32>
    %15 = vector.broadcast %13 : vector<1x1x128xf32> to vector<1x3x128xf32>
    %16 = arith.mulf %15, %14 : vector<1x3x128xf32>
    %cst = arith.constant dense<0xFF800000> : vector<1x128xf32>
    %17 = vector.multi_reduction <maximumf>, %16, %cst [1] : vector<1x3x128xf32> to vector<1x128xf32>
    %18 = vector.shape_cast %17 : vector<1x128xf32> to vector<1x1x128xf32>
    %19 = tpu.iota {dimensions = array<i32: 1>} : vector<1x3x128xi32>
    %20 = vector.broadcast %18 : vector<1x1x128xf32> to vector<1x3x128xf32>
    %21 = arith.cmpf oeq, %16, %20 : vector<1x3x128xf32>
    %c3_i32 = arith.constant 3 : i32
    %22 = vector.broadcast %c3_i32 : i32 to vector<1x3x128xi32>
    %23 = arith.select %21, %19, %22 : vector<1x3x128xi1>, vector<1x3x128xi32>
    %cst_6 = arith.constant dense<2147483647> : vector<1x128xi32>
    %24 = vector.multi_reduction <minsi>, %23, %cst_6 [1] : vector<1x3x128xi32> to vector<1x128xi32>
    %25 = vector.shape_cast %24 : vector<1x128xi32> to vector<1x1x128xi32>
    %26 = arith.sitofp %25 : vector<1x1x128xi32> to vector<1x1x128xf32>
    %cst_7 = arith.constant 5.000000e-01 : f32
    %27 = vector.broadcast %cst_7 : f32 to vector<1x1x128xf32>
    %28 = arith.mulf %11, %27 : vector<1x1x128xf32>
    %29 = arith.subf %9, %28 : vector<1x1x128xf32>
    %cst_8 = arith.constant 5.000000e-01 : f32
    %30 = vector.broadcast %cst_8 : f32 to vector<1x1x128xf32>
    %31 = arith.mulf %12, %30 : vector<1x1x128xf32>
    %32 = arith.subf %10, %31 : vector<1x1x128xf32>
    %cst_9 = arith.constant 5.000000e-01 : f32
    %33 = vector.broadcast %cst_9 : f32 to vector<1x1x128xf32>
    %34 = arith.mulf %11, %33 : vector<1x1x128xf32>
    %35 = arith.addf %9, %34 : vector<1x1x128xf32>
    %cst_10 = arith.constant 5.000000e-01 : f32
    %36 = vector.broadcast %cst_10 : f32 to vector<1x1x128xf32>
    %37 = arith.mulf %12, %36 : vector<1x1x128xf32>
    %38 = arith.addf %10, %37 : vector<1x1x128xf32>
    %39 = arith.subf %35, %29 : vector<1x1x128xf32>
    %40 = arith.subf %38, %32 : vector<1x1x128xf32>
    %41 = arith.mulf %39, %40 : vector<1x1x128xf32>
    %cst_11 = arith.constant 2.500000e-01 : f32
    %42 = vector.broadcast %cst_11 : f32 to vector<1x1x128xf32>
    %43 = arith.cmpf ogt, %18, %42 : vector<1x1x128xf32>
    %44 = arith.extui %43 : vector<1x1x128xi1> to vector<1x1x128xi32>
    %45 = arith.sitofp %44 : vector<1x1x128xi32> to vector<1x1x128xf32>
    %c0_12 = arith.constant 0 : index
    %c0_13 = arith.constant 0 : index
    %c0_14 = arith.constant 0 : index
    %46 = vector.load %arg4[%c0_12, %c0_13, %c0_14] : memref<1x8x128xf32, #tpu.memory_space<vmem>>, vector<1x8x128xf32>
    %47 = vector.extract_strided_slice %46 {offsets = [0, 0, 0], sizes = [1, 1, 128], strides = [1, 1, 1]} : vector<1x8x128xf32> to vector<1x1x128xf32>
    %48 = vector.extract_strided_slice %46 {offsets = [0, 1, 0], sizes = [1, 1, 128], strides = [1, 1, 1]} : vector<1x8x128xf32> to vector<1x1x128xf32>
    %49 = vector.extract_strided_slice %46 {offsets = [0, 2, 0], sizes = [1, 1, 128], strides = [1, 1, 1]} : vector<1x8x128xf32> to vector<1x1x128xf32>
    %50 = vector.extract_strided_slice %46 {offsets = [0, 3, 0], sizes = [1, 1, 128], strides = [1, 1, 1]} : vector<1x8x128xf32> to vector<1x1x128xf32>
    %51 = vector.extract_strided_slice %46 {offsets = [0, 4, 0], sizes = [1, 1, 128], strides = [1, 1, 1]} : vector<1x8x128xf32> to vector<1x1x128xf32>
    %52 = vector.extract_strided_slice %46 {offsets = [0, 5, 0], sizes = [1, 3, 128], strides = [1, 1, 1]} : vector<1x8x128xf32> to vector<1x3x128xf32>
    %53 = vector.broadcast %51 : vector<1x1x128xf32> to vector<1x3x128xf32>
    %54 = arith.mulf %53, %52 : vector<1x3x128xf32>
    %cst_15 = arith.constant dense<0xFF800000> : vector<1x128xf32>
    %55 = vector.multi_reduction <maximumf>, %54, %cst_15 [1] : vector<1x3x128xf32> to vector<1x128xf32>
    %56 = vector.shape_cast %55 : vector<1x128xf32> to vector<1x1x128xf32>
    %57 = tpu.iota {dimensions = array<i32: 1>} : vector<1x3x128xi32>
    %58 = vector.broadcast %56 : vector<1x1x128xf32> to vector<1x3x128xf32>
    %59 = arith.cmpf oeq, %54, %58 : vector<1x3x128xf32>
    %c3_i32_16 = arith.constant 3 : i32
    %60 = vector.broadcast %c3_i32_16 : i32 to vector<1x3x128xi32>
    %61 = arith.select %59, %57, %60 : vector<1x3x128xi1>, vector<1x3x128xi32>
    %cst_17 = arith.constant dense<2147483647> : vector<1x128xi32>
    %62 = vector.multi_reduction <minsi>, %61, %cst_17 [1] : vector<1x3x128xi32> to vector<1x128xi32>
    %63 = vector.shape_cast %62 : vector<1x128xi32> to vector<1x1x128xi32>
    %64 = arith.sitofp %63 : vector<1x1x128xi32> to vector<1x1x128xf32>
    %cst_18 = arith.constant 5.000000e-01 : f32
    %65 = vector.broadcast %cst_18 : f32 to vector<1x1x128xf32>
    %66 = arith.mulf %49, %65 : vector<1x1x128xf32>
    %67 = arith.subf %47, %66 : vector<1x1x128xf32>
    %cst_19 = arith.constant 5.000000e-01 : f32
    %68 = vector.broadcast %cst_19 : f32 to vector<1x1x128xf32>
    %69 = arith.mulf %50, %68 : vector<1x1x128xf32>
    %70 = arith.subf %48, %69 : vector<1x1x128xf32>
    %cst_20 = arith.constant 5.000000e-01 : f32
    %71 = vector.broadcast %cst_20 : f32 to vector<1x1x128xf32>
    %72 = arith.mulf %49, %71 : vector<1x1x128xf32>
    %73 = arith.addf %47, %72 : vector<1x1x128xf32>
    %cst_21 = arith.constant 5.000000e-01 : f32
    %74 = vector.broadcast %cst_21 : f32 to vector<1x1x128xf32>
    %75 = arith.mulf %50, %74 : vector<1x1x128xf32>
    %76 = arith.addf %48, %75 : vector<1x1x128xf32>
    %77 = arith.subf %73, %67 : vector<1x1x128xf32>
    %78 = arith.subf %76, %70 : vector<1x1x128xf32>
    %79 = arith.mulf %77, %78 : vector<1x1x128xf32>
    %cst_22 = arith.constant 1.000000e-03 : f32
    %80 = vector.broadcast %cst_22 : f32 to vector<1x1x128xf32>
    %81 = arith.cmpf ogt, %56, %80 : vector<1x1x128xf32>
    %82 = arith.extui %81 : vector<1x1x128xi1> to vector<1x1x128xi32>
    %83 = arith.sitofp %82 : vector<1x1x128xi32> to vector<1x1x128xf32>
    %cst_23 = arith.constant 0.000000e+00 : f32
    %84 = vector.broadcast %cst_23 : f32 to vector<1x1x128xf32>
    %85 = tpu.concatenate %67, %70, %73, %76, %79, %64, %83, %84 in 1 : vector<1x1x128xf32>, vector<1x1x128xf32>, vector<1x1x128xf32>, vector<1x1x128xf32>, vector<1x1x128xf32>, vector<1x1x128xf32>, vector<1x1x128xf32>, vector<1x1x128xf32> -> vector<1x8x128xf32>
    %86 = vector.shape_cast %85 : vector<1x8x128xf32> to vector<8x128xf32>
    %87 = tpu.transpose %86, [1, 0] : vector<8x128xf32> -> vector<128x8xf32>
    %88 = vector.shape_cast %87 : vector<128x8xf32> to vector<1x128x8xf32>
    %89 = vector.extract_strided_slice %88 {offsets = [0, 0, 0], sizes = [1, 128, 1], strides = [1, 1, 1]} : vector<1x128x8xf32> to vector<1x128x1xf32>
    %90 = vector.extract_strided_slice %88 {offsets = [0, 0, 1], sizes = [1, 128, 1], strides = [1, 1, 1]} : vector<1x128x8xf32> to vector<1x128x1xf32>
    %91 = vector.extract_strided_slice %88 {offsets = [0, 0, 2], sizes = [1, 128, 1], strides = [1, 1, 1]} : vector<1x128x8xf32> to vector<1x128x1xf32>
    %92 = vector.extract_strided_slice %88 {offsets = [0, 0, 3], sizes = [1, 128, 1], strides = [1, 1, 1]} : vector<1x128x8xf32> to vector<1x128x1xf32>
    %93 = vector.extract_strided_slice %88 {offsets = [0, 0, 4], sizes = [1, 128, 1], strides = [1, 1, 1]} : vector<1x128x8xf32> to vector<1x128x1xf32>
    %94 = vector.extract_strided_slice %88 {offsets = [0, 0, 5], sizes = [1, 128, 1], strides = [1, 1, 1]} : vector<1x128x8xf32> to vector<1x128x1xf32>
    %95 = vector.extract_strided_slice %88 {offsets = [0, 0, 6], sizes = [1, 128, 1], strides = [1, 1, 1]} : vector<1x128x8xf32> to vector<1x128x1xf32>
    %96 = vector.broadcast %91 : vector<1x128x1xf32> to vector<1x128x128xf32>
    %97 = vector.broadcast %35 : vector<1x1x128xf32> to vector<1x128x128xf32>
    %98 = arith.minimumf %96, %97 : vector<1x128x128xf32>
    %99 = vector.broadcast %89 : vector<1x128x1xf32> to vector<1x128x128xf32>
    %100 = vector.broadcast %29 : vector<1x1x128xf32> to vector<1x128x128xf32>
    %101 = arith.maximumf %99, %100 : vector<1x128x128xf32>
    %102 = arith.subf %98, %101 : vector<1x128x128xf32>
    %cst_24 = arith.constant 0.000000e+00 : f32
    %103 = vector.broadcast %cst_24 : f32 to vector<1x128x128xf32>
    %104 = arith.maximumf %102, %103 : vector<1x128x128xf32>
    %105 = vector.broadcast %92 : vector<1x128x1xf32> to vector<1x128x128xf32>
    %106 = vector.broadcast %38 : vector<1x1x128xf32> to vector<1x128x128xf32>
    %107 = arith.minimumf %105, %106 : vector<1x128x128xf32>
    %108 = vector.broadcast %90 : vector<1x128x1xf32> to vector<1x128x128xf32>
    %109 = vector.broadcast %32 : vector<1x1x128xf32> to vector<1x128x128xf32>
    %110 = arith.maximumf %108, %109 : vector<1x128x128xf32>
    %111 = arith.subf %107, %110 : vector<1x128x128xf32>
    %cst_25 = arith.constant 0.000000e+00 : f32
    %112 = vector.broadcast %cst_25 : f32 to vector<1x128x128xf32>
    %113 = arith.maximumf %111, %112 : vector<1x128x128xf32>
    %114 = arith.mulf %104, %113 : vector<1x128x128xf32>
    %115 = vector.broadcast %93 : vector<1x128x1xf32> to vector<1x128x128xf32>
    %116 = vector.broadcast %41 : vector<1x1x128xf32> to vector<1x128x128xf32>
    %117 = arith.addf %115, %116 : vector<1x128x128xf32>
    %118 = arith.subf %117, %114 : vector<1x128x128xf32>
    %cst_26 = arith.constant 9.99999996E-13 : f32
    %119 = vector.broadcast %cst_26 : f32 to vector<1x128x128xf32>
    %120 = arith.maximumf %118, %119 : vector<1x128x128xf32>
    %121 = tpu.reciprocal %120 {approx = true} : vector<1x128x128xf32> -> vector<1x128x128xf32>
    %122 = arith.mulf %114, %121 : vector<1x128x128xf32>
    %123 = vector.broadcast %94 : vector<1x128x1xf32> to vector<1x128x128xf32>
    %124 = vector.broadcast %26 : vector<1x1x128xf32> to vector<1x128x128xf32>
    %125 = arith.cmpf oeq, %123, %124 : vector<1x128x128xf32>
    %cst_27 = arith.constant 5.000000e-01 : f32
    %126 = vector.broadcast %cst_27 : f32 to vector<1x128x1xf32>
    %127 = arith.cmpf ogt, %95, %126 : vector<1x128x1xf32>
    %128 = vector.broadcast %127 : vector<1x128x1xi1> to vector<1x128x128xi1>
    %129 = arith.andi %125, %128 : vector<1x128x128xi1>
    %cst_28 = arith.constant 0.000000e+00 : f32
    %130 = vector.broadcast %cst_28 : f32 to vector<1x128x128xf32>
    %131 = arith.select %129, %122, %130 : vector<1x128x128xi1>, vector<1x128x128xf32>
    %cst_29 = arith.constant dense<0xFF800000> : vector<1x128xf32>
    %132 = vector.multi_reduction <maximumf>, %131, %cst_29 [1] : vector<1x128x128xf32> to vector<1x128xf32>
    %c0_30 = arith.constant 0 : index
    %c0_31 = arith.constant 0 : index
    %133 = vector.load %arg7[%c0_30, %c0_31] : memref<1x128xf32, #tpu.memory_space<vmem>>, vector<1x128xf32>
    %134 = arith.maximumf %133, %132 : vector<1x128xf32>
    %c0_32 = arith.constant 0 : index
    %c0_33 = arith.constant 0 : index
    %135 = vector.load %arg7[%c0_32, %c0_33] : memref<1x128xf32, #tpu.memory_space<vmem>>, vector<1x128xf32>
    tpu.vector_store %arg7[%c0_32, %c0_33], %134 {strides = array<i32>} : memref<1x128xf32, #tpu.memory_space<vmem>>, vector<1x128xf32>,
    %c0_i32_34 = arith.constant 0 : i32
    %136 = arith.cmpi eq, %arg2, %c0_i32_34 : i32
    %137 = arith.extui %136 : i1 to i32
    %c0_i32_35 = arith.constant 0 : i32
    %138 = arith.cmpi ne, %137, %c0_i32_35 : i32
    scf.if %138 {
      %139 = vector.shape_cast %45 : vector<1x1x128xf32> to vector<1x128xf32>
      %c0_36 = arith.constant 0 : index
      %c0_37 = arith.constant 0 : index
      %140 = vector.load %arg7[%c0_36, %c0_37] : memref<1x128xf32, #tpu.memory_space<vmem>>, vector<1x128xf32>
      %141 = arith.mulf %140, %139 : vector<1x128xf32>
      %c0_38 = arith.constant 0 : index
      %c0_39 = arith.constant 0 : index
      %c0_40 = arith.constant 0 : index
      %142 = vector.load %arg5[%c0_38, %c0_39, %c0_40] : memref<1x1x128xf32, #tpu.memory_space<vmem>>, vector<1x1x128xf32>
      %143 = vector.shape_cast %141 : vector<1x128xf32> to vector<1x1x128xf32>
      %144 = arith.addf %142, %143 : vector<1x1x128xf32>
      %c0_41 = arith.constant 0 : index
      %c0_42 = arith.constant 0 : index
      %c0_43 = arith.constant 0 : index
      %145 = vector.load %arg5[%c0_41, %c0_42, %c0_43] : memref<1x1x128xf32, #tpu.memory_space<vmem>>, vector<1x1x128xf32>
      tpu.vector_store %arg5[%c0_41, %c0_42, %c0_43], %144 {strides = array<i32>} : memref<1x1x128xf32, #tpu.memory_space<vmem>>, vector<1x1x128xf32>,
      %c0_44 = arith.constant 0 : index
      %c0_45 = arith.constant 0 : index
      %c0_46 = arith.constant 0 : index
      %146 = vector.load %arg6[%c0_44, %c0_45, %c0_46] : memref<1x1x128xf32, #tpu.memory_space<vmem>>, vector<1x1x128xf32>
      %147 = vector.shape_cast %139 : vector<1x128xf32> to vector<1x1x128xf32>
      %148 = arith.addf %146, %147 : vector<1x1x128xf32>
      %c0_47 = arith.constant 0 : index
      %c0_48 = arith.constant 0 : index
      %c0_49 = arith.constant 0 : index
      %149 = vector.load %arg6[%c0_47, %c0_48, %c0_49] : memref<1x1x128xf32, #tpu.memory_space<vmem>>, vector<1x1x128xf32>
      tpu.vector_store %arg6[%c0_47, %c0_48, %c0_49], %148 {strides = array<i32>} : memref<1x1x128xf32, #tpu.memory_space<vmem>>, vector<1x1x128xf32>,
    } else {
    }
    return
  }
  func.func @transform_0(%arg0: i32, %arg1: i32, %arg2: i32) -> (i32, i32, i32) {
    %c0_i32 = arith.constant 0 : i32
    %c0_i32_0 = arith.constant 0 : i32
    return %arg0, %c0_i32, %arg1 : i32, i32, i32
  }
  func.func @transform_1(%arg0: i32, %arg1: i32, %arg2: i32) -> (i32, i32, i32) {
    %c0_i32 = arith.constant 0 : i32
    %c0_i32_0 = arith.constant 0 : i32
    return %arg0, %c0_i32, %arg2 : i32, i32, i32
  }
  func.func @transform_2(%arg0: i32, %arg1: i32, %arg2: i32) -> (i32, i32, i32) {
    %c0_i32 = arith.constant 0 : i32
    %c0_i32_0 = arith.constant 0 : i32
    %c0_i32_1 = arith.constant 0 : i32
    return %arg0, %c0_i32, %c0_i32_0 : i32, i32, i32
  }
  func.func @transform_3(%arg0: i32, %arg1: i32, %arg2: i32) -> (i32, i32, i32) {
    %c0_i32 = arith.constant 0 : i32
    %c0_i32_0 = arith.constant 0 : i32
    %c0_i32_1 = arith.constant 0 : i32
    return %arg0, %c0_i32, %c0_i32_0 : i32, i32, i32
  }
}

</mosaic_0001>

<bundles_post_ra>
// kernel: tpu_custom_call.1
= control target key start
LH: loop header
LB: loop body
LE: loop exit
PB: predicated region body
PF: predicated region fallthrough
CT: control target
= control target key end

     0   :  { %9 = vsyncpa [#allocation4], 0  ;;  %s2628_s0 = inlined_call_operand.hbm [shape: f32[2,8,128], index: 0, kind: input, shape index: {}]   ;;  %s2629_s1 = inlined_call_operand.hbm [shape: f32[2,8,128], index: 1, kind: input, shape index: {}]   ;;  %s2630_s2 = inlined_call_operand.hbm [shape: f32[2,1,128], index: 2, kind: output, shape index: {0}]   ;;  %s2631_s3 = inlined_call_operand.hbm [shape: f32[2,1,128], index: 3, kind: output, shape index: {1}]  }
   0x1   :  { %11 = vsyncpa [#allocation4 + $0x1], 0 }
   0x2   :  { %12 = vsyncpa [#allocation7], 0 }
   0x3   :  { %14 = vsyncpa [#allocation7 + $0x1], 0 }
   0x4   :  { %15 = vsyncpa [#allocation5], 0 }
   0x5   :  { %17 = vsyncpa [#allocation5 + $0x1], 0 }
   0x6   :  { %18 = vsyncpa [#allocation10], 0 }
   0x7   :  { %20 = vsyncpa [#allocation10 + $0x1], 0  ;;  %s1797_s12 = smov 0   ;;  %s1799_s13 = smov 0  }
   0x8   :  { %s1801_s14 = smov 0   ;;  %s1803_s15 = smov 0  }
   0x9   :  { %s1805_s16 = smov 0   ;;  %s1807_s17 = smov 0  }
   0xa LB: > { %s1386_s18 = sadd.s32 4294967295, %s1763_s17   ;;  %s1387_s19 = sadd.s32 4294967294, %s1763_s17   ;;  %s1763_s17 = sphi %s1807_s17, %s26_s17   ;;  %s1759_s16 = sphi %s1805_s16, %s2662_s16   ;;  %s1755_s15 = sphi %s1803_s15, %s2661_s15   ;;  %s1751_s14 = sphi %s1801_s14, %s2660_s14   ;;  %s1747_s13 = sphi %s1799_s13, %s2659_s13   ;;  %s1743_s12 = sphi %s1797_s12, %s2658_s12  }
   0xb   : > { %s45_s20 = sadd.s32 1, %s1759_s16  ;;  %s54_s21 = sadd.s32 1, %s1751_s14 }
   0xc   : > { %p47_p0 = scmp.ge.s32.totalorder %s45_s20, 2  ;;  %p61_p1 = scmp.ne.s32.totalorder %s1751_s14, %s1747_s13 }
   0xd   : > { %p62_p2 = scmp.eq.s32.totalorder %s1763_s17, 0  ;;  %p67_p3 = scmp.ne.s32.totalorder %s1747_s13, %s1743_s12 }
   0xe   : > { %s2664_s20 = smov (%p47_p0, %s45_s20), 0  ;;  %p68_p5 = scmp.eq.s32.totalorder %s1386_s18, 0 }
   0xf   : > { %p1838_p4 = por %p62_p2, %p61_p1  ;;  %s49_s23 = ssub.s32 %s1759_s16, %s2664_s20 }
  0x10   : > { %p119_p6 = scmp.eq.s32.totalorder %s1386_s18, 1  ;;  %p52_p7 = scmp.eq.s32.totalorder %s49_s23, 0 }
  0x11   : > { %p1844_p8 = por %p68_p5, %p67_p3  ;;  %p125_p10 = scmp.eq.s32.totalorder %s1387_s19, 1 }
  0x12   : > { %p1848_p9 = por %p119_p6, %p61_p1  ;;  %p1425_p13 = scmp.lt.s32.totalorder %s1763_s17, 2 }
  0x13   : > { %s2637_s24 = scalar_select %p1844_p8, 1, 0 }
  0x14   : > { %s2638_s25 = scalar_select %p1848_p9, 1, 0 }
  0x15   : > { %s1853_s26 = scalar_select %p52_p7, %s1751_s14, %s54_s21  }
  0x16   : > { %p1855_p11 = por %p125_p10, %p67_p3  ;;  %s1862_s28 = sand.u32 1, %s1751_s14  }
  0x17   : > { %s1390_s29 = sshll.u32 %s1862_s28, 3  ;;  %s1391_s30 = sshll.u32 %s1759_s16, 7 }
  0x18   : > { %s2639_s27 = scalar_select %p1855_p11, 1, 0 }
  0x19   : > { %s1871_s6 = scalar_lea.hbm %s2628_s0, %s1391_s30  ;;  %s175_s7 = scalar_lea.vmem [#allocation3], %s1390_s29 }
  0x1a   : > { %s183_s8 = sshll.u32 %s175_s7, 4  ;;  %p1879_p0 = pnand %p1425_p13, %p1838_p4  ;;  %s1875_s8 = int_to_ptr.vmem [resolvable:$true] %s183_s8 }
  0x1b   : > { %s172_s10 = scalar_lea.sflag [#allocation4], %s1862_s28  ;;  %s1585_s11 = scalar_lea.hbm %s1871_s6, 128 }
  0x1c   : > { %p1586_p3 = scmp.ne.s32.totalorder %s1871_s6, %s1585_s11  ;;  %p1587_p5 = pneg %p1879_p0 }
  0x1d   : > { %s1590_s21 = scalar_lea.hbm %s2628_s0, 256  ;;  %p1591_p4 = scmp.lt.u32.totalorder %s1871_s6, %s2628_s0 }
  0x1e   : > { %p1588_p6 = pnand %p1587_p5, %p1586_p3  ;;  %p1592_p10 = scmp.lt.u32.totalorder %s1590_s21, %s1585_s11 }
  0x1f   : > { %p1594_p12 = scmp.lt.u32.totalorder %s1585_s11, %s1871_s6 }
  0x20   : > { %p1589_p7 = pneg %p1588_p6  ;;  %p1593_p13 = por %p1592_p10, %p1591_p4 }
  0x22   : > { %p1595_p1 = por %p1594_p12, %p1593_p13 }
  0x24   : > { %p1596_p2 = pnand %p1595_p1, %p1589_p7 }
  0x26   : > { %1599 = shalt.err (!%p1596_p2)
}
  0x27   : > { %s1600_s4 = scalar_lea.vmem %s1875_s8, 128  ;;  %s1765_s5 = smov [#allocation3]  }
  0x28   : > { %p1601_p3 = scmp.ne.s32.totalorder %s1875_s8, %s1600_s4  ;;  %s1605_s7 = sshll.u32 %s1765_s5, 4  ;;  %s1606_s7 = int_to_ptr.vmem [resolvable:$false] %s1605_s7 }
  0x29   : > { %s1607_s18 = scalar_lea.vmem %s1606_s7, 256  ;;  %p1608_p9 = scmp.lt.s32.totalorder %s1875_s8, %s1606_s7 }
  0x2a   : > { %p1603_p6 = pnand %p1601_p3, %p1587_p5  ;;  %p1609_p4 = scmp.lt.s32.totalorder %s1607_s18, %s1600_s4 }
  0x2c   : > { %p1604_p11 = pneg %p1603_p6  ;;  %p1610_p10 = por %p1609_p4, %p1608_p9 }
  0x2e   : > { %p1611_p12 = pnand %p1610_p10, %p1604_p11 }
  0x30   : > { %1614 = shalt.err (!%p1611_p12)
}
  0x31   : > { %1414 = dma.hbm_to_vmem [thread:$0]  (!%p1879_p0), %s1871_s6, 128, %s1875_s8, %s172_s10  }
  0x32   : > { %p2641_p1 = scmp.lt.s32.totalorder %s1763_s17, 3  ;;  %p2642_p2 = scmp.ge.s32.totalorder %s1763_s17, 1 }
  0x33   : > { %s1924_s22 = scalar_lea.hbm %s2629_s1, %s1391_s30  ;;  %s194_s23 = scalar_lea.vmem [#allocation6], %s1390_s29 }
  0x34   : > { %p1915_p7 = pnand %p2642_p2, %p2641_p1  ;;  %s202_s4 = sshll.u32 %s194_s23, 4  ;;  %s203_s4 = int_to_ptr.vmem [resolvable:$true] %s202_s4 }
  0x35   : > { %s191_s6 = scalar_lea.sflag [#allocation7], %s1862_s28  ;;  %s1615_s8 = scalar_lea.hbm %s1924_s22, 128 }
  0x36   : > { %s2643_s11 = scalar_select %p1915_p7, 1, 0 }
  0x37   : > { %p1616_p9 = scmp.ne.s32.totalorder %s1924_s22, %s1615_s8  ;;  %s1620_s30 = scalar_lea.hbm %s2629_s1, 256 }
  0x38   : > { %p1621_p3 = scmp.lt.u32.totalorder %s1924_s22, %s2629_s1  ;;  %p1622_p6 = scmp.lt.u32.totalorder %s1620_s30, %s1615_s8 }
  0x39   : > { %p1618_p11 = pnand %p1616_p9, %p1587_p5  ;;  %p1624_p10 = scmp.lt.u32.totalorder %s1615_s8, %s1924_s22 }
  0x3a   : > { %p1623_p4 = por %p1622_p6, %p1621_p3 }
  0x3b   : > { %p1619_p13 = pneg %p1618_p11 }
  0x3c   : > { %p1625_p12 = por %p1624_p10, %p1623_p4 }
  0x3e   : > { %p1626_p1 = pnand %p1625_p12, %p1619_p13 }
  0x40   : > { %1629 = shalt.err (!%p1626_p1)
}
  0x41   : > { %s1630_s28 = scalar_lea.vmem %s203_s4, 128  ;;  %s1766_s29 = smov [#allocation6]  }
  0x42   : > { %p1631_p2 = scmp.ne.s32.totalorder %s203_s4, %s1630_s28  ;;  %s1635_s19 = sshll.u32 %s1766_s29, 4  ;;  %s1636_s19 = int_to_ptr.vmem [resolvable:$false] %s1635_s19 }
  0x43   : > { %s1637_s21 = scalar_lea.vmem %s1636_s19, 256  ;;  %p1638_p8 = scmp.lt.s32.totalorder %s203_s4, %s1636_s19 }
  0x44   : > { %p1633_p9 = pnand %p1631_p2, %p1587_p5  ;;  %p1639_p7 = scmp.lt.s32.totalorder %s1637_s21, %s1630_s28 }
  0x46   : > { %p1634_p11 = pneg %p1633_p9  ;;  %p1640_p3 = por %p1639_p7, %p1638_p8 }
  0x48   : > { %p1641_p6 = pnand %p1640_p3, %p1634_p11 }
  0x4a   : > { %1644 = shalt.err (!%p1641_p6)
}
  0x4b   : > { %1417 = dma.hbm_to_vmem [thread:$0]  (!%p1879_p0), %s1924_s22, 128, %s203_s4, %s191_s6  }
  0x4c   : > { %p2644_p13 = scmp.ne.s32.totalorder %s2643_s11, 0 }
  0x4d   : > { %s1951_s23 = sand.u32 (!%p2644_p13), 1, %s1747_s13   ;;  %p2645_p5 = scmp.ne.s32.totalorder (!%p2644_p13), %s2637_s24, 0 }
  0x4e   : > { %211 = sbr.rel (%p2644_p13) target bundleno = 784 (0x310), region = 28  ;;  %s1395_s8 = sshll.u32 (!%p2644_p13), %s1951_s23, 3 }
  0x4f   : > { %s214_s10 = scalar_lea.sflag (!%p2644_p13), [#allocation4], %s1951_s23  ;;  %s217_s5 = scalar_lea.vmem (!%p2644_p13), [#allocation3], %s1395_s8 }
  0x55   : > { %1726 = dma.done.wait (%p2645_p5), %s214_s10, 128  }
  0x56   : > { %1728 = vsyncadd (%p2645_p5), %s214_s10, 4294967168  ;;  %s223_s9 = scalar_lea.sflag [#allocation7], %s1951_s23  ;;  %s226_s22 = scalar_lea.vmem [#allocation6], %s1395_s8 }
  0x57   : > { %1730 = dma.done.wait (%p2645_p5), %s223_s9, 128  }
  0x58   : > { %1732 = vsyncadd (%p2645_p5), %s223_s9, 4294967168  ;;  %v270_v0 = vlaneseq  ;;  %v2634_v1 = vmov 0.0   ;;  %v1768_v3 = vmov 0   ;;  %v313_v5 = vld [vmem:[%s226_s22] sm:$0xff]  ;;  %v269_v6 = vld [vmem:[%s217_s5] sm:$0xff]  ;;  %vm275_vm0 = vcmask 1047557  }
  0x59   : > { %268 = vst [vmem:[#allocation2] sm:$0x1] %v2634_v1  ;;  %1484 = vset.pattern.permute.xlu1 %v1768_v3  ;;  %v299_v9 = vmul.f32 0.5, %v269_v6  ;;  %v339_v11 = vmul.f32 0.5, %v313_v5  ;;  %vm359_vm4 = vcmask 1041408   ;;  %vm361_vm5 = vcmask 1042432  }
  0x5a   : > { %v271_v2 = vshrl.u32 %v270_v0, 7  ;;  %vm363_vm7 = vcmask 1043456   ;;  %vm365_vm10 = vcmask 1044480   ;;  %vm367_vm11 = vcmask 1045504   ;;  %s2424_s24 = scalar_lea.vmem [#allocation8], %s1951_s23  ;;  %s2429_s11 = scalar_lea.vmem [#allocation9], %s1951_s23 }
  0x5b   : > { %v301_v13 = vrot.slane %v299_v9, 2  ;;  %v341_v22 = vrot.slane %v339_v11, 2  ;;  %vm369_vm12 = vcmask 1046528   ;;  %v1771_v9 = vmov 1   ;;  %s1399_s4 = sshll.u32 %s1755_s15, 4  ;;  %s1256_s18 = sshll.u32 %s2429_s11, 4  ;;  %s2471_s18 = int_to_ptr.vmem [resolvable:$true] %s1256_s18 }
  0x5c   : > { %v272_v4 = vsub.s32 4, %v271_v2  ;;  %v485_v14 = vsub.s32 0, %v271_v2  ;;  %v685_v16 = vsub.s32 1, %v271_v2  ;;  %v286_v41 = vrot.slane %v271_v2, 3  ;;  %s2467_s7 = scalar_lea.hbm %s2631_s3, %s1399_s4  ;;  %s1231_s28 = scalar_lea.sflag [#allocation10], %s1951_s23 }
  0x5d   : > { %v303_v20 = vsub.f32 %v269_v6, %v301_v13  ;;  %v304_v21 = vadd.f32 %v301_v13, %v269_v6  ;;  %v343_v32 = vsub.f32 %v313_v5, %v341_v22  ;;  %v344_v35 = vadd.f32 %v341_v22, %v313_v5  ;;  %s1645_s29 = scalar_lea.vmem %s2471_s18, 16  ;;  %p2653_p0 = scmp.ne.s32.totalorder %s2638_s25, 0 }
  0x5e   : > { %v317_v7 = vrot.slane %v313_v5, %v272_v4  ;;  %v273_v8 = vrot.slane %v269_v6, %v272_v4  ;;  %p1646_p8 = scmp.ne.s32.totalorder %s2471_s18, %s1645_s29  ;;  %s1775_s19 = smov [#allocation9]  }
  0x5f   : > { %v305_v25 = vsub.f32 %v304_v21, %v303_v20  ;;  %v1968_v26 = vrot.slane %v304_v21, %v485_v14  ;;  %v1970_v27 = vrot.slane %v303_v20, %v485_v14  ;;  %v1972_v28 = vrot.slane %v304_v21, %v685_v16  ;;  %s1649_s21 = sshll.u32 %s1775_s19, 4  ;;  %s1650_s21 = int_to_ptr.vmem [resolvable:$false] %s1649_s21 }
  0x60   : > { %v318_v10 = vmul.f32 %v317_v7, %v313_v5  ;;  %v274_v12 = vmul.f32 %v273_v8, %v269_v6  ;;  %v1974_v33 = vrot.slane %v303_v20, %v685_v16  ;;  %v345_v43 = vsub.f32 %v344_v35, %v343_v32  ;;  %p1647_p7 = pnand %p1646_p8, %p2653_p0  ;;  %s1651_s8 = scalar_lea.vmem %s1650_s21, 32 }
  0x61   : > { %v307_v31 = vrot.slane %v305_v25, 1  ;;  %v354_v51 = vrot.slane %v344_v35, 6  ;;  %v1769_v5 = vmov 2   ;;  %v1770_v8 = vmov 3   ;;  %p1652_p10 = scmp.lt.s32.totalorder %s2471_s18, %s1650_s21  ;;  %p1653_p12 = scmp.lt.s32.totalorder %s1651_s8, %s1645_s29 }
  0x62   : > { %v319_v15 = vsel %vm275_vm0, %v318_v10, -inf  ;;  %v276_v17 = vsel %vm275_vm0, %v274_v12, -inf  ;;  %v347_v48 = vrot.slane %v345_v43, 1  ;;  %p1648_p4 = pneg %p1647_p7 }
  0x63   : > { %v320_v18 = vrot.slane %v319_v15, 4  ;;  %v277_v19 = vrot.slane %v276_v17, 4  ;;  %v309_v37 = vmul.f32 %v307_v31, %v305_v25  ;;  %v360_v55 = vsel %vm359_vm4, %v343_v32, %v354_v51  ;;  %p1654_p1 = por %p1653_p12, %p1652_p10 }
  0x64   : > { %v349_v53 = vmul.f32 %v347_v48, %v345_v43  ;;  %v362_v59 = vsel %vm361_vm5, %v360_v55, %v354_v51  ;;  %v1773_v25 = vmov 5  }
  0x65   : > { %v321_v23 = vmax.f32 %v319_v15, %v320_v18  ;;  %v278_v24 = vmax.f32 %v276_v17, %v277_v19  ;;  %v1976_v40 = vrot.slane %v309_v37, %v485_v14  ;;  %p1655_p2 = pnand %p1654_p1, %p1648_p4 }
  0x66   : > { %v357_v57 = vrot.slane %v349_v53, 4 }
  0x67   : > { %v322_v29 = vrot.slane %v321_v23, 2  ;;  %v279_v30 = vrot.slane %v278_v24, 2 }
  0x68   : > { %v364_v61 = vsel %vm363_vm7, %v362_v59, %v357_v57  ;;  %v1774_v59 = vmov 6  }
  0x69   : > { %v323_v34 = vmax.f32 %v321_v23, %v322_v29  ;;  %v280_v36 = vmax.f32 %v278_v24, %v279_v30  ;;  %v1772_v24 = vmov 4  }
  0x6b   : > { %v324_v38 = vrot.slane %v323_v34, 1  ;;  %v281_v39 = vrot.slane %v280_v36, 1 }
  0x6d   : > { %v325_v42 = vmax.f32 %v323_v34, %v324_v38  ;;  %v1978_v44 = vmax.f32 %v280_v36, %v281_v39 }
  0x6f   : > { %vm326_vm1 = vcmp.eq.f32.partialorder %v318_v10, %v325_v42  ;;  %vm285_vm2 = vcmp.eq.f32.partialorder %v274_v12, %v1978_v44  ;;  %vm350_vm8 = vcmp.gt.f32.partialorder %v325_v42, 0.001 }
  0x70   : > { %v327_v45 = vsel %vm326_vm1, %v286_v41, 3  ;;  %v287_v46 = vsel %vm285_vm2, %v286_v41, 3  ;;  %v1398_v63 = vsel %vm350_vm8, 1.0, %v2634_v1 }
  0x71   : > { %v328_v47 = vsel %vm275_vm0, %v327_v45, 2147483647  ;;  %v1983_v49 = vsel %vm275_vm0, %v287_v46, 2147483647 }
  0x72   : > { %v329_v50 = vrot.slane %v328_v47, 4 }
  0x74   : > { %vm330_vm3 = vcmp.lt.s32.totalorder %v328_v47, %v329_v50 }
  0x75   : > { %v331_v52 = vsel %vm330_vm3, %v328_v47, %v329_v50 }
  0x76   : > { %v332_v54 = vrot.slane %v331_v52, 2 }
  0x78   : > { %vm333_vm6 = vcmp.lt.s32.totalorder %v331_v52, %v332_v54 }
  0x79   : > { %v334_v56 = vsel %vm333_vm6, %v331_v52, %v332_v54 }
  0x7a   : > { %v335_v58 = vrot.slane %v334_v56, 1 }
  0x7c   : > { %vm336_vm9 = vcmp.lt.s32.totalorder %v334_v56, %v335_v58 }
  0x7d   : > { %v337_v60 = vsel %vm336_vm9, %v334_v56, %v335_v58 }
  0x7e   : > { %v338_v62 = vcvt.s32.f32 %v337_v60 }
  0x80   : > { %v366_v0 = vsel %vm365_vm10, %v364_v61, %v338_v62 }
  0x81   : > { %v368_v2 = vsel %vm367_vm11, %v366_v0, %v1398_v63 }
  0x82   : > { %v370_v4 = vsel %vm369_vm12, %v368_v2, 0.0 }
  0x83   : > { %371 = vxpose.xlu0.b32.start.end [1/1] (short) %v370_v4, 128 }
  0xac   : > { %1483 = vset.pattern.permute.xlu0 %v1769_v5 }
 0x103   : > { %v1987_v6 = vpop.trf.xlu0 }
 0x104   : > { %504 = vperm.xlu1 %1484, %v1987_v6   ;;  %405 = vperm.xlu0 %1483, %v1987_v6   ;;  %vm1063_vm2 = vcmp.gt.f32.partialorder %v1987_v6, 0.5 }
 0x107   : > { %v1991_v7 = vpop.trf.xlu0 }
 0x108   : > { %1485 = vset.pattern.permute.xlu1 %v1770_v8  ;;  %1486 = vset.pattern.permute.xlu0 %v1771_v9  ;;  %vm1064_vm13 = vcmp.gt.f32.partialorder %v1991_v7, 0.5 }
 0x109   : > { %620 = vperm.xlu1 %1485, %v1987_v6   ;;  %704 = vperm.xlu0 %1486, %v1987_v6   ;;  %v1080_v60 = vsel %vm1064_vm13, 1, %v1768_v3 }
 0x10b   : > { %v1997_v10 = vpop.trf.xlu0 }
 0x10c   : > { %vm1065_vm3 = vcmp.gt.f32.partialorder %v1997_v10, 0.5 }
 0x10d   : > { %1487 = vset.pattern.permute.xlu1 %v1769_v5  ;;  %1489 = vset.pattern.permute.xlu0 %v1770_v8 }
 0x10e   : > { %624 = vperm.xlu0 %1489, %v1991_v7   ;;  %410 = vperm.xlu1 %1487, %v1991_v7  }
 0x10f   : > { %v2003_v11 = vpop.trf.xlu0 }
 0x110   : > { %vm1066_vm4 = vcmp.gt.f32.partialorder %v2003_v11, 0.5 }
 0x112   : > { %1498 = vset.pattern.permute.xlu0 %v1771_v9  ;;  %1488 = vset.pattern.permute.xlu1 %v1768_v3 }
 0x113   : > { %508 = vperm.xlu1 %1488, %v1991_v7   ;;  %716 = vperm.xlu0 %1498, %v2003_v11   ;;  %v2009_v12 = vpop.trf.xlu0 }
 0x114   : > { %vm1067_vm14 = vcmp.gt.f32.partialorder %v2009_v12, 0.5 }
 0x115   : > { %v1083_v4 = vsel %vm1067_vm14, 1, %v1768_v3  ;;  %vm310_vm14 = vcmp.gt.f32.partialorder %v1978_v44, 0.25 }
 0x117   : > { %1490 = vset.pattern.permute.xlu1 %v1771_v9  ;;  %1501 = vset.pattern.permute.xlu0 %v1770_v8  ;;  %v2013_v13 = vpop.trf.xlu0 }
 0x118   : > { %708 = vperm.xlu1 %1490, %v1991_v7   ;;  %636 = vperm.xlu0 %1501, %v2009_v12   ;;  %vm1068_vm5 = vcmp.gt.f32.partialorder %v2013_v13, 0.5 }
 0x11b   : > { %v2017_v14 = vpop.trf.xlu0 }
 0x11c   : > { %1491 = vset.pattern.permute.xlu1 %v1769_v5  ;;  %1506 = vset.pattern.permute.xlu0 %v1771_v9  ;;  %vm1069_vm15 = vcmp.gt.f32.partialorder %v2017_v14, 0.5 }
 0x11d   : > { %415 = vperm.xlu1 %1491, %v1997_v10   ;;  %724 = vperm.xlu0 %1506, %v2013_v13  }
 0x11f   : > { %v2023_v15 = vpop.trf.xlu0 }
 0x120   : > { %vm1070_vm6 = vcmp.gt.f32.partialorder %v2023_v15, 0.5 }
 0x121   : > { %1492 = vset.pattern.permute.xlu1 %v1768_v3  ;;  %1509 = vset.pattern.permute.xlu0 %v1770_v8 }
 0x122   : > { %512 = vperm.xlu1 %1492, %v1997_v10   ;;  %644 = vperm.xlu0 %1509, %v2017_v14  }
 0x123   : > { %v2029_v16 = vpop.trf.xlu0 }
 0x124   : > { %vm1071_vm7 = vcmp.gt.f32.partialorder %v2029_v16, 0.5 }
 0x126   : > { %1493 = vset.pattern.permute.xlu1 %v1770_v8  ;;  %1514 = vset.pattern.permute.xlu0 %v1771_v9 }
 0x127   : > { %628 = vperm.xlu1 %1493, %v1997_v10   ;;  %732 = vperm.xlu0 %1514, %v2023_v15   ;;  %v2035_v17 = vpop.trf.xlu0 }
 0x128   : > { %vm1072_vm0 = vcmp.gt.f32.partialorder %v2035_v17, 0.5 }
 0x12b   : > { %1494 = vset.pattern.permute.xlu1 %v1771_v9  ;;  %1517 = vset.pattern.permute.xlu0 %v1770_v8  ;;  %v2041_v18 = vpop.trf.xlu0 }
 0x12c   : > { %712 = vperm.xlu1 %1494, %v1997_v10   ;;  %652 = vperm.xlu0 %1517, %v2029_v16   ;;  %vm1073_vm8 = vcmp.gt.f32.partialorder %v2041_v18, 0.5 }
 0x12f   : > { %v2047_v19 = vpop.trf.xlu0 }
 0x130   : > { %1495 = vset.pattern.permute.xlu1 %v1769_v5  ;;  %1522 = vset.pattern.permute.xlu0 %v1771_v9  ;;  %vm1074_vm9 = vcmp.gt.f32.partialorder %v2047_v19, 0.5 }
 0x131   : > { %420 = vperm.xlu1 %1495, %v2003_v11   ;;  %740 = vperm.xlu0 %1522, %v2035_v17  }
 0x133   : > { %v2053_v20 = vpop.trf.xlu0 }
 0x134   : > { %vm1075_vm10 = vcmp.gt.f32.partialorder %v2053_v20, 0.5 }
 0x135   : > { %1496 = vset.pattern.permute.xlu1 %v1768_v3  ;;  %1525 = vset.pattern.permute.xlu0 %v1770_v8 }
 0x136   : > { %516 = vperm.xlu1 %1496, %v2003_v11   ;;  %660 = vperm.xlu0 %1525, %v2041_v18  }
 0x137   : > { %v2061_v21 = vpop.trf.xlu0 }
 0x138   : > { %vm1076_vm1 = vcmp.gt.f32.partialorder %v2061_v21, 0.5 }
 0x13a   : > { %1497 = vset.pattern.permute.xlu1 %v1770_v8  ;;  %1530 = vset.pattern.permute.xlu0 %v1771_v9 }
 0x13b   : > { %632 = vperm.xlu1 %1497, %v2003_v11   ;;  %748 = vperm.xlu0 %1530, %v2047_v19   ;;  %v2069_v22 = vpop.trf.xlu0 }
 0x13c   : > { %vm1077_vm11 = vcmp.gt.f32.partialorder %v2069_v22, 0.5 }
 0x13f   : > { %1499 = vset.pattern.permute.xlu1 %v1769_v5  ;;  %1532 = vset.pattern.permute.xlu0 %v1768_v3  ;;  %v2074_v23 = vpop.trf.xlu0 }
 0x140   : > { %425 = vperm.xlu1 %1499, %v2009_v12   ;;  %552 = vperm.xlu0 %1532, %v2053_v20   ;;  %vm1078_vm12 = vcmp.gt.f32.partialorder %v2074_v23, 0.5 }
 0x144   : > { %1500 = vset.pattern.permute.xlu1 %v1768_v3  ;;  %1533 = vset.pattern.permute.xlu0 %v1770_v8 }
 0x145   : > { %520 = vperm.xlu1 %1500, %v2009_v12   ;;  %668 = vperm.xlu0 %1533, %v2053_v20  }
 0x149   : > { %1502 = vset.pattern.permute.xlu1 %v1771_v9  ;;  %676 = vperm.xlu0 %1533, %v2069_v22  }
 0x14a   : > { %720 = vperm.xlu1 %1502, %v2009_v12  }
 0x14d   : > { %1539 = vset.pattern.permute.xlu0 %v1768_v3 }
 0x14e   : > { %1503 = vset.pattern.permute.xlu1 %v1769_v5  ;;  %564 = vperm.xlu0 %1539, %v2074_v23  }
 0x14f   : > { %430 = vperm.xlu1 %1503, %v2013_v13  }
 0x152   : > { %1542 = vset.pattern.permute.xlu0 %v1771_v9 }
 0x153   : > { %1504 = vset.pattern.permute.xlu1 %v1768_v3  ;;  %756 = vperm.xlu0 %1542, %v2061_v21  }
 0x154   : > { %524 = vperm.xlu1 %1504, %v2013_v13  }
 0x157   : > { %764 = vperm.xlu0 %1542, %v2074_v23  }
 0x158   : > { %1505 = vset.pattern.permute.xlu1 %v1770_v8 }
 0x159   : > { %640 = vperm.xlu1 %1505, %v2013_v13  }
 0x15b   : > { %1544 = vset.pattern.permute.xlu0 %v1772_v24 }
 0x15c   : > { %840 = vperm.xlu0 %1544, %v1991_v7  }
 0x15d   : > { %1507 = vset.pattern.permute.xlu1 %v1769_v5 }
 0x15e   : > { %435 = vperm.xlu1 %1507, %v2017_v14  }
 0x160   : > { %852 = vperm.xlu0 %1544, %v2009_v12  }
 0x162   : > { %1508 = vset.pattern.permute.xlu1 %v1768_v3 }
 0x163   : > { %528 = vperm.xlu1 %1508, %v2017_v14  }
 0x164   : > { %860 = vperm.xlu0 %1544, %v2017_v14  }
 0x167   : > { %1510 = vset.pattern.permute.xlu1 %v1771_v9 }
 0x168   : > { %728 = vperm.xlu1 %1510, %v2017_v14   ;;  %868 = vperm.xlu0 %1544, %v2029_v16  }
 0x16c   : > { %1511 = vset.pattern.permute.xlu1 %v1769_v5  ;;  %876 = vperm.xlu0 %1544, %v2041_v18  }
 0x16d   : > { %440 = vperm.xlu1 %1511, %v2023_v15  }
 0x170   : > { %884 = vperm.xlu0 %1544, %v2053_v20  }
 0x171   : > { %1512 = vset.pattern.permute.xlu1 %v1768_v3 }
 0x172   : > { %532 = vperm.xlu1 %1512, %v2023_v15  }
 0x174   : > { %892 = vperm.xlu0 %1544, %v2069_v22  }
 0x176   : > { %1513 = vset.pattern.permute.xlu1 %v1770_v8 }
 0x177   : > { %648 = vperm.xlu1 %1513, %v2023_v15  }
 0x178   : > { %1545 = vset.pattern.permute.xlu0 %v1773_v25 }
 0x179   : > { %984 = vperm.xlu0 %1545, %v1987_v6  }
 0x17b   : > { %1515 = vset.pattern.permute.xlu1 %v1769_v5 }
 0x17c   : > { %445 = vperm.xlu1 %1515, %v2029_v16  }
 0x17d   : > { %996 = vperm.xlu0 %1545, %v2003_v11  }
 0x180   : > { %1516 = vset.pattern.permute.xlu1 %v1768_v3 }
 0x181   : > { %536 = vperm.xlu1 %1516, %v2029_v16   ;;  %1004 = vperm.xlu0 %1545, %v2013_v13  }
 0x183   : > { %v505_v29 = vpop.permute.xlu1 %504  ;;  %v406_v30 = vpop.permute.xlu0 %405 }
 0x184   : > { %v571_v31 = vmax.f32 %v505_v29, %v1970_v27  ;;  %v487_v32 = vmin.f32 %v406_v30, %v1968_v26 }
 0x185   : > { %1518 = vset.pattern.permute.xlu1 %v1771_v9  ;;  %1012 = vperm.xlu0 %1545, %v2023_v15  }
 0x186   : > { %v587_v34 = vsub.f32 %v487_v32, %v571_v31  ;;  %736 = vperm.xlu1 %1518, %v2029_v16   ;;  %v1085_v32 = vsel %vm1069_vm15, 1, %v1768_v3 }
 0x188   : > { %v621_v35 = vpop.permute.xlu1 %620  ;;  %v705_v36 = vpop.permute.xlu0 %704  ;;  %v603_v41 = vmax.f32 %v587_v34, 0.0 }
 0x189   : > { %v687_v37 = vmin.f32 %v621_v35, %v1972_v28  ;;  %v771_v38 = vmax.f32 %v705_v36, %v1974_v33  ;;  %1016 = vperm.xlu0 %1545, %v2029_v16   ;;  %v1089_v16 = vsel %vm1073_vm8, 1, %v1768_v3 }
 0x18a   : > { %1519 = vset.pattern.permute.xlu1 %v1769_v5 }
 0x18b   : > { %v787_v39 = vsub.f32 %v687_v37, %v771_v38  ;;  %450 = vperm.xlu1 %1519, %v2035_v17  }
 0x18d   : > { %v803_v42 = vmax.f32 %v787_v39, 0.0  ;;  %v411_v43 = vpop.permute.xlu1 %410  ;;  %1028 = vperm.xlu0 %1545, %v2047_v19   ;;  %v625_v45 = vpop.permute.xlu0 %624  ;;  %v1088_v39 = vsel %vm1072_vm0, 1, %v1768_v3 }
 0x18e   : > { %v688_v46 = vmin.f32 %v625_v45, %v1972_v28  ;;  %v488_v51 = vmin.f32 %v411_v43, %v1968_v26  ;;  %v1092_v45 = vsel %vm1076_vm1, 1, %v1768_v3 }
 0x18f   : > { %1520 = vset.pattern.permute.xlu1 %v1768_v3  ;;  %v2128_v47 = vmul.f32 %v803_v42, %v603_v41 }
 0x190   : > { %540 = vperm.xlu1 %1520, %v2035_v17  }
 0x191   : > { %1032 = vperm.xlu0 %1545, %v2053_v20  }
 0x192   : > { %v509_v48 = vpop.permute.xlu1 %508  ;;  %v2132_v50 = vpop.permute.xlu0 %716 }
 0x193   : > { %v572_v52 = vmax.f32 %v509_v48, %v1970_v27  ;;  %v774_v53 = vmax.f32 %v2132_v50, %v1974_v33 }
 0x194   : > { %1521 = vset.pattern.permute.xlu1 %v1770_v8 }
 0x195   : > { %v588_v54 = vsub.f32 %v488_v51, %v572_v52  ;;  %656 = vperm.xlu1 %1521, %v2035_v17   ;;  %1044 = vperm.xlu0 %1545, %v2074_v23  }
 0x197   : > { %v709_v55 = vpop.permute.xlu1 %708  ;;  %v2142_v56 = vpop.permute.xlu0 %636  ;;  %v604_v62 = vmax.f32 %v588_v54, 0.0 }
 0x198   : > { %v772_v57 = vmax.f32 %v709_v55, %v1974_v33  ;;  %v691_v58 = vmin.f32 %v2142_v56, %v1972_v28 }
 0x199   : > { %1523 = vset.pattern.permute.xlu1 %v1769_v5  ;;  %1551 = vset.pattern.permute.xlu0 %v1774_v59 }
 0x19a   : > { %v788_v61 = vsub.f32 %v688_v46, %v772_v57  ;;  %455 = vperm.xlu1 %1523, %v2041_v18   ;;  %1099 = vperm.xlu0 %1551, %v1080_v60  }
 0x19c   : > { %v804_v63 = vmax.f32 %v788_v61, 0.0  ;;  %v416_v0 = vpop.permute.xlu1 %415  ;;  %v2152_v2 = vpop.permute.xlu0 %724 }
 0x19d   : > { %v776_v29 = vmax.f32 %v2152_v2, %v1974_v33  ;;  %v489_v35 = vmin.f32 %v416_v0, %v1968_v26 }
 0x19e   : > { %1524 = vset.pattern.permute.xlu1 %v1768_v3  ;;  %1108 = vperm.xlu0 %1551, %v1083_v4   ;;  %v2159_v30 = vmul.f32 %v804_v63, %v604_v62 }
 0x19f   : > { %544 = vperm.xlu1 %1524, %v2041_v18  }
 0x1a1   : > { %v513_v31 = vpop.permute.xlu1 %512  ;;  %v2163_v34 = vpop.permute.xlu0 %644 }
 0x1a2   : > { %v573_v36 = vmax.f32 %v513_v31, %v1970_v27  ;;  %1114 = vperm.xlu0 %1551, %v1085_v32   ;;  %v693_v37 = vmin.f32 %v2163_v34, %v1972_v28 }
 0x1a3   : > { %1526 = vset.pattern.permute.xlu1 %v1771_v9 }
 0x1a4   : > { %v589_v38 = vsub.f32 %v489_v35, %v573_v36  ;;  %744 = vperm.xlu1 %1526, %v2041_v18  }
 0x1a6   : > { %v629_v41 = vpop.permute.xlu1 %628  ;;  %1123 = vperm.xlu0 %1551, %v1088_v39   ;;  %v2174_v42 = vpop.permute.xlu0 %732  ;;  %v605_v57 = vmax.f32 %v589_v38, 0.0 }
 0x1a7   : > { %v778_v43 = vmax.f32 %v2174_v42, %v1974_v33  ;;  %v689_v51 = vmin.f32 %v629_v41, %v1972_v28 }
 0x1a8   : > { %1527 = vset.pattern.permute.xlu1 %v1769_v5 }
 0x1a9   : > { %460 = vperm.xlu1 %1527, %v2047_v19  }
 0x1aa   : > { %1135 = vperm.xlu0 %1551, %v1092_v45  }
 0x1ab   : > { %v713_v46 = vpop.permute.xlu1 %712  ;;  %v2181_v48 = vpop.permute.xlu0 %652 }
 0x1ac   : > { %v773_v52 = vmax.f32 %v713_v46, %v1974_v33  ;;  %v695_v54 = vmin.f32 %v2181_v48, %v1972_v28 }
 0x1ad   : > { %1528 = vset.pattern.permute.xlu1 %v1768_v3 }
 0x1ae   : > { %v789_v55 = vsub.f32 %v689_v51, %v773_v52  ;;  %548 = vperm.xlu1 %1528, %v2047_v19  }
 0x1b0   : > { %v805_v60 = vmax.f32 %v789_v55, 0.0  ;;  %v421_v61 = vpop.permute.xlu1 %420  ;;  %v2189_v62 = vpop.permute.xlu0 %740 }
 0x1b1   : > { %v780_v63 = vmax.f32 %v2189_v62, %v1974_v33  ;;  %v490_v32 = vmin.f32 %v421_v61, %v1968_v26 }
 0x1b2   : > { %1529 = vset.pattern.permute.xlu1 %v1770_v8  ;;  %v2194_v0 = vmul.f32 %v805_v60, %v605_v57 }
 0x1b3   : > { %664 = vperm.xlu1 %1529, %v2047_v19  }
 0x1b5   : > { %v517_v4 = vpop.permute.xlu1 %516  ;;  %v2197_v31 = vpop.permute.xlu0 %660 }
 0x1b6   : > { %v574_v35 = vmax.f32 %v517_v4, %v1970_v27 }
 0x1b7   : > { %1531 = vset.pattern.permute.xlu1 %v1769_v5 }
 0x1b8   : > { %v590_v38 = vsub.f32 %v490_v32, %v574_v35  ;;  %465 = vperm.xlu1 %1531, %v2053_v20  }
 0x1ba   : > { %v633_v39 = vpop.permute.xlu1 %632  ;;  %v2205_v41 = vpop.permute.xlu0 %748  ;;  %v606_v52 = vmax.f32 %v590_v38, 0.0 }
 0x1bb   : > { %v690_v45 = vmin.f32 %v633_v39, %v1972_v28 }
 0x1bc   : > { %470 = vperm.xlu1 %1531, %v2061_v21  }
 0x1bd   : > { %v790_v51 = vsub.f32 %v690_v45, %v774_v53 }
 0x1bf   : > { %v806_v55 = vmax.f32 %v790_v51, 0.0  ;;  %v426_v57 = vpop.permute.xlu1 %425  ;;  %v2214_v60 = vpop.permute.xlu0 %552 }
 0x1c0   : > { %1534 = vset.pattern.permute.xlu1 %v1768_v3  ;;  %v491_v50 = vmin.f32 %v426_v57, %v1968_v26 }
 0x1c1   : > { %556 = vperm.xlu1 %1534, %v2061_v21   ;;  %v2220_v4 = vmul.f32 %v806_v55, %v606_v52 }
 0x1c4   : > { %v521_v32 = vpop.permute.xlu1 %520  ;;  %v2222_v35 = vpop.permute.xlu0 %668 }
 0x1c5   : > { %v575_v53 = vmax.f32 %v521_v32, %v1970_v27  ;;  %1535 = vset.pattern.permute.xlu1 %v1770_v8 }
 0x1c6   : > { %672 = vperm.xlu1 %1535, %v2061_v21  }
 0x1c7   : > { %v591_v39 = vsub.f32 %v491_v50, %v575_v53 }
 0x1c8   : > { %v2230_v45 = vpop.permute.xlu0 %676 }
 0x1c9   : > { %v721_v51 = vpop.permute.xlu1 %720  ;;  %v607_v1 = vmax.f32 %v591_v39, 0.0 }
 0x1ca   : > { %v775_v55 = vmax.f32 %v721_v51, %v1974_v33  ;;  %1536 = vset.pattern.permute.xlu1 %v1769_v5 }
 0x1cb   : > { %475 = vperm.xlu1 %1536, %v2069_v22  }
 0x1cc   : > { %v791_v57 = vsub.f32 %v691_v58, %v775_v55 }
 0x1cd   : > { %v2240_v32 = vpop.permute.xlu0 %564 }
 0x1ce   : > { %v807_v50 = vmax.f32 %v791_v57, 0.0  ;;  %v431_v53 = vpop.permute.xlu1 %430 }
 0x1cf   : > { %1537 = vset.pattern.permute.xlu1 %v1768_v3  ;;  %v492_v46 = vmin.f32 %v431_v53, %v1968_v26 }
 0x1d0   : > { %560 = vperm.xlu1 %1537, %v2069_v22   ;;  %v823_v51 = vmul.f32 %v807_v50, %v607_v1 }
 0x1d2   : > { %v2246_v52 = vpop.permute.xlu0 %756 }
 0x1d3   : > { %v525_v61 = vpop.permute.xlu1 %524 }
 0x1d4   : > { %v576_v56 = vmax.f32 %v525_v61, %v1970_v27  ;;  %1538 = vset.pattern.permute.xlu1 %v1769_v5 }
 0x1d5   : > { %480 = vperm.xlu1 %1538, %v2074_v23  }
 0x1d6   : > { %v592_v58 = vsub.f32 %v492_v46, %v576_v56  ;;  %v2252_v39 = vpop.permute.xlu0 %764 }
 0x1d8   : > { %v641_v55 = vpop.permute.xlu1 %640  ;;  %v608_v5 = vmax.f32 %v592_v58, 0.0 }
 0x1d9   : > { %v692_v57 = vmin.f32 %v641_v55, %v1972_v28  ;;  %1540 = vset.pattern.permute.xlu1 %v1770_v8 }
 0x1da   : > { %680 = vperm.xlu1 %1540, %v2074_v23  }
 0x1db   : > { %v792_v1 = vsub.f32 %v692_v57, %v776_v29  ;;  %v841_v50 = vpop.permute.xlu0 %840 }
 0x1dc   : > { %v904_v61 = vadd.f32 %v1976_v40, %v841_v50 }
 0x1dd   : > { %v808_v53 = vmax.f32 %v792_v1, 0.0  ;;  %v436_v38 = vpop.permute.xlu1 %435 }
 0x1de   : > { %v920_v46 = vsub.f32 %v904_v61, %v2159_v30  ;;  %1541 = vset.pattern.permute.xlu1 %v1771_v9  ;;  %v493_v57 = vmin.f32 %v436_v38, %v1968_v26 }
 0x1df   : > { %752 = vperm.xlu1 %1541, %v2053_v20   ;;  %v853_v56 = vpop.permute.xlu0 %852  ;;  %v2264_v8 = vmul.f32 %v808_v53, %v608_v5  ;;  %v2649_v20 = vmax.f32 %v2240_v32, %v1970_v27 }
 0x1e0   : > { %v936_v55 = vmax.f32 %v920_v46, 1e-12  ;;  %v907_v36 = vadd.f32 %v1976_v40, %v853_v56 }
 0x1e2   : > { %1553 = vrcp.f32 %v936_v55  ;;  %v923_v2 = vsub.f32 %v907_v36, %v823_v51  ;;  %v529_v29 = vpop.permute.xlu1 %528 }
 0x1e3   : > { %v577_v58 = vmax.f32 %v529_v29, %v1970_v27  ;;  %760 = vperm.xlu1 %1541, %v2069_v22   ;;  %v861_v5 = vpop.permute.xlu0 %860 }
 0x1e4   : > { %v939_v1 = vmax.f32 %v923_v2, 1e-12 }
 0x1e5   : > { %v593_v50 = vsub.f32 %v493_v57, %v577_v58 }
 0x1e6   : > { %1555 = vrcp.f32 %v939_v1 }
 0x1e7   : > { %v729_v9 = vpop.permute.xlu1 %728  ;;  %1543 = vset.pattern.permute.xlu1 %v1772_v24  ;;  %v609_v53 = vmax.f32 %v593_v50, 0.0  ;;  %v909_v24 = vadd.f32 %v1976_v40, %v861_v5 }
 0x1e8   : > { %v777_v61 = vmax.f32 %v729_v9, %v1974_v33  ;;  %836 = vperm.xlu1 %1543, %v1987_v6  }
 0x1ea   : > { %v793_v36 = vsub.f32 %v693_v37, %v777_v61 }
 0x1ec   : > { %v1554_v38 = vpop.eup %1553  ;;  %v809_v46 = vmax.f32 %v793_v36, 0.0  ;;  %v441_v56 = vpop.permute.xlu1 %440  ;;  %844 = vperm.xlu1 %1543, %v1997_v10  }
 0x1ed   : > { %v2278_v55 = vmul.f32 %v1554_v38, %v2159_v30  ;;  %v494_v1 = vmin.f32 %v441_v56, %v1968_v26 }
 0x1ee   : > { %v825_v2 = vmul.f32 %v809_v46, %v609_v53 }
 0x1f0   : > { %v1556_v29 = vpop.eup %1555  ;;  %v925_v57 = vsub.f32 %v909_v24, %v825_v2  ;;  %848 = vperm.xlu1 %1543, %v2003_v11   ;;  %v1084_v11 = vsel %vm1068_vm5, 1, %v1768_v3 }
 0x1f1   : > { %v533_v58 = vpop.permute.xlu1 %532  ;;  %v2282_v34 = vmul.f32 %v1556_v29, %v823_v51 }
 0x1f2   : > { %v941_v37 = vmax.f32 %v925_v57, 1e-12  ;;  %v578_v50 = vmax.f32 %v533_v58, %v1970_v27 }
 0x1f4   : > { %1557 = vrcp.f32 %v941_v37  ;;  %v594_v9 = vsub.f32 %v494_v1, %v578_v50  ;;  %856 = vperm.xlu1 %1543, %v2013_v13  }
 0x1f6   : > { %v649_v30 = vpop.permute.xlu1 %648  ;;  %v610_v51 = vmax.f32 %v594_v9, 0.0  ;;  %v869_v9 = vpop.permute.xlu0 %868 }
 0x1f7   : > { %v694_v61 = vmin.f32 %v649_v30, %v1972_v28 }
 0x1f8   : > { %864 = vperm.xlu1 %1543, %v2023_v15   ;;  %v2647_v15 = vmax.f32 %v2205_v41, %v1974_v33  ;;  %v1087_v41 = vsel %vm1071_vm7, 1, %v1768_v3 }
 0x1f9   : > { %v794_v36 = vsub.f32 %v694_v61, %v778_v43  ;;  %v911_v61 = vadd.f32 %v1976_v40, %v869_v9  ;;  %v1082_v9 = vsel %vm1066_vm4, 1, %v1768_v3 }
 0x1fb   : > { %v810_v5 = vmax.f32 %v794_v36, 0.0  ;;  %v446_v38 = vpop.permute.xlu1 %445 }
 0x1fc   : > { %872 = vperm.xlu1 %1543, %v2035_v17   ;;  %v495_v29 = vmin.f32 %v446_v38, %v1968_v26 }
 0x1fd   : > { %v2293_v53 = vmul.f32 %v810_v5, %v610_v51 }
 0x1fe   : > { %v1558_v46 = vpop.eup %1557 }
 0x1ff   : > { %v2295_v56 = vmul.f32 %v1558_v46, %v825_v2 }
 0x200   : > { %v537_v24 = vpop.permute.xlu1 %536  ;;  %880 = vperm.xlu1 %1543, %v2047_v19  }
 0x201   : > { %v579_v57 = vmax.f32 %v537_v24, %v1970_v27 }
 0x203   : > { %v595_v58 = vsub.f32 %v495_v29, %v579_v57 }
 0x204   : > { %888 = vperm.xlu1 %1543, %v2061_v21  }
 0x205   : > { %v737_v42 = vpop.permute.xlu1 %736  ;;  %v611_v2 = vmax.f32 %v595_v58, 0.0 }
 0x206   : > { %v779_v43 = vmax.f32 %v737_v42, %v1974_v33 }
 0x208   : > { %v795_v37 = vsub.f32 %v695_v54, %v779_v43  ;;  %896 = vperm.xlu1 %1543, %v2074_v23  }
 0x20a   : > { %v811_v1 = vmax.f32 %v795_v37, 0.0  ;;  %v451_v50 = vpop.permute.xlu1 %450 }
 0x20b   : > { %v496_v30 = vmin.f32 %v451_v50, %v1968_v26 }
 0x20c   : > { %v827_v36 = vmul.f32 %v811_v1, %v611_v2  ;;  %1546 = vset.pattern.permute.xlu1 %v1773_v25  ;;  %v1081_v1 = vsel %vm1065_vm3, 1, %v1768_v3 }
 0x20d   : > { %988 = vperm.xlu1 %1546, %v1991_v7  }
 0x20e   : > { %v927_v51 = vsub.f32 %v911_v61, %v827_v36 }
 0x20f   : > { %v541_v5 = vpop.permute.xlu1 %540 }
 0x210   : > { %v943_v38 = vmax.f32 %v927_v51, 1e-12  ;;  %v580_v48 = vmax.f32 %v541_v5, %v1970_v27  ;;  %v877_v5 = vpop.permute.xlu0 %876 }
 0x211   : > { %992 = vperm.xlu1 %1546, %v1997_v10  }
 0x212   : > { %1559 = vrcp.f32 %v943_v38  ;;  %v596_v54 = vsub.f32 %v496_v30, %v580_v48  ;;  %v2646_v30 = vmin.f32 %v2197_v31, %v1972_v28  ;;  %v913_v48 = vadd.f32 %v1976_v40, %v877_v5 }
 0x213   : > { %v784_v5 = vmax.f32 %v2246_v52, %v1974_v33 }
 0x214   : > { %v657_v46 = vpop.permute.xlu1 %656  ;;  %v612_v57 = vmax.f32 %v596_v54, 0.0 }
 0x215   : > { %v696_v24 = vmin.f32 %v657_v46, %v1972_v28  ;;  %1000 = vperm.xlu1 %1546, %v2009_v12   ;;  %v1079_v12 = vsel %vm1063_vm2, 1, %v1768_v3 }
 0x217   : > { %v796_v29 = vsub.f32 %v696_v24, %v780_v63  ;;  %v1086_v24 = vsel %vm1070_vm6, 1, %v1768_v3 }
 0x219   : > { %v812_v7 = vmax.f32 %v796_v29, 0.0  ;;  %v456_v58 = vpop.permute.xlu1 %455  ;;  %1008 = vperm.xlu1 %1546, %v2017_v14  }
 0x21a   : > { %v497_v42 = vmin.f32 %v456_v58, %v1968_v26 }
 0x21b   : > { %v2320_v43 = vmul.f32 %v812_v7, %v612_v57 }
 0x21c   : > { %v1560_v37 = vpop.eup %1559 }
 0x21d   : > { %1547 = vset.pattern.permute.xlu1 %v1774_v59  ;;  %v2324_v2 = vmul.f32 %v1560_v37, %v827_v36 }
 0x21e   : > { %v545_v62 = vpop.permute.xlu1 %544  ;;  %1096 = vperm.xlu1 %1547, %v1079_v12  }
 0x21f   : > { %v581_v63 = vmax.f32 %v545_v62, %v1970_v27 }
 0x221   : > { %v597_v14 = vsub.f32 %v497_v42, %v581_v63 }
 0x222   : > { %1102 = vperm.xlu1 %1547, %v1081_v1  }
 0x223   : > { %v745_v6 = vpop.permute.xlu1 %744  ;;  %v613_v10 = vmax.f32 %v597_v14, 0.0 }
 0x224   : > { %v781_v50 = vmax.f32 %v745_v6, %v1974_v33  ;;  %v2648_v6 = vmax.f32 %v2214_v60, %v1970_v27 }
 0x226   : > { %v797_v61 = vsub.f32 %v2646_v30, %v781_v50  ;;  %1105 = vperm.xlu1 %1547, %v1082_v9  }
 0x228   : > { %v813_v36 = vmax.f32 %v797_v61, 0.0  ;;  %v461_v51 = vpop.permute.xlu1 %460 }
 0x229   : > { %v498_v38 = vmin.f32 %v461_v51, %v1968_v26 }
 0x22a   : > { %v829_v54 = vmul.f32 %v813_v36, %v613_v10  ;;  %1111 = vperm.xlu1 %1547, %v1084_v11   ;;  %v1090_v36 = vsel %vm1074_vm9, 1, %v1768_v3 }
 0x22c   : > { %v929_v46 = vsub.f32 %v913_v48, %v829_v54 }
 0x22d   : > { %v549_v31 = vpop.permute.xlu1 %548 }
 0x22e   : > { %v945_v29 = vmax.f32 %v929_v46, 1e-12  ;;  %v582_v13 = vmax.f32 %v549_v31, %v1970_v27  ;;  %1117 = vperm.xlu1 %1547, %v1086_v24   ;;  %v885_v31 = vpop.permute.xlu0 %884 }
 0x230   : > { %1561 = vrcp.f32 %v945_v29  ;;  %v598_v57 = vsub.f32 %v498_v38, %v582_v13 }
 0x232   : > { %v665_v7 = vpop.permute.xlu1 %664  ;;  %1548 = vset.pattern.permute.xlu1 %v1773_v25  ;;  %v614_v37 = vmax.f32 %v598_v57, 0.0  ;;  %v893_v29 = vpop.permute.xlu0 %892 }
 0x233   : > { %v698_v58 = vmin.f32 %v665_v7, %v1972_v28  ;;  %1020 = vperm.xlu1 %1548, %v2035_v17   ;;  %v1093_v7 = vsel %vm1077_vm11, 1, %v1768_v3 }
 0x235   : > { %v798_v42 = vsub.f32 %v698_v58, %v2647_v15  ;;  %v1094_v15 = vsel %vm1078_vm12, 1, %v1768_v3 }
 0x237   : > { %v814_v12 = vmax.f32 %v798_v42, 0.0  ;;  %v466_v62 = vpop.permute.xlu1 %465  ;;  %1024 = vperm.xlu1 %1548, %v2041_v18   ;;  %v786_v42 = vmax.f32 %v2252_v39, %v1974_v33 }
 0x238   : > { %v499_v63 = vmin.f32 %v466_v62, %v1968_v26 }
 0x239   : > { %v2351_v14 = vmul.f32 %v814_v12, %v614_v37 }
 0x23a   : > { %v1562_v1 = vpop.eup %1561  ;;  %v2356_v17 = vsub.f32 %v499_v63, %v2648_v6 }
 0x23b   : > { %v471_v50 = vpop.permute.xlu1 %470  ;;  %1549 = vset.pattern.permute.xlu1 %v1774_v59  ;;  %v2360_v9 = vmul.f32 %v1562_v1, %v829_v54 }
 0x23c   : > { %v500_v30 = vmin.f32 %v471_v50, %v1968_v26  ;;  %1120 = vperm.xlu1 %1549, %v1087_v41   ;;  %v615_v6 = vmax.f32 %v2356_v17, 0.0  ;;  %v917_v17 = vadd.f32 %v1976_v40, %v893_v29 }
 0x240   : > { %v557_v61 = vpop.permute.xlu1 %556  ;;  %1126 = vperm.xlu1 %1549, %v1089_v16  }
 0x241   : > { %v584_v60 = vmax.f32 %v557_v61, %v1970_v27  ;;  %v2651_v61 = vmin.f32 %v2230_v45, %v1972_v28 }
 0x243   : > { %v600_v10 = vsub.f32 %v500_v30, %v584_v60  ;;  %v915_v30 = vadd.f32 %v1976_v40, %v885_v31  ;;  %v289_v31 = vrot.slane %v1983_v49, 4 }
 0x244   : > { %1129 = vperm.xlu1 %1549, %v1090_v36  }
 0x245   : > { %v673_v51 = vpop.permute.xlu1 %672  ;;  %v616_v18 = vmax.f32 %v600_v10, 0.0  ;;  %vm290_vm13 = vcmp.lt.s32.totalorder %v1983_v49, %v289_v31 }
 0x246   : > { %v700_v38 = vmin.f32 %v673_v51, %v1972_v28 }
 0x248   : > { %v800_v11 = vsub.f32 %v700_v38, %v784_v5  ;;  %1550 = vset.pattern.permute.xlu1 %v1773_v25  ;;  %v1091_v25 = vsel %vm1075_vm10, 1, %v1768_v3  ;;  %v2650_v3 = vmin.f32 %v2222_v35, %v1972_v28 }
 0x249   : > { %1036 = vperm.xlu1 %1550, %v2061_v21  }
 0x24a   : > { %v816_v48 = vmax.f32 %v800_v11, 0.0  ;;  %v476_v19 = vpop.permute.xlu1 %475 }
 0x24b   : > { %v501_v54 = vmin.f32 %v476_v19, %v1968_v26 }
 0x24c   : > { %v2374_v46 = vmul.f32 %v816_v48, %v616_v18 }
 0x24d   : > { %1040 = vperm.xlu1 %1550, %v2069_v22   ;;  %v2391_v22 = vpop.permute.xlu0 %984 }
 0x24f   : > { %v561_v52 = vpop.permute.xlu1 %560 }
 0x250   : > { %v585_v24 = vmax.f32 %v561_v52, %v1970_v27 }
 0x251   : > { %1552 = vset.pattern.permute.xlu1 %v1774_v59  ;;  %v2395_v1 = vpop.permute.xlu0 %996 }
 0x252   : > { %v601_v21 = vsub.f32 %v501_v54, %v585_v24  ;;  %1132 = vperm.xlu1 %1552, %v1091_v25  }
 0x254   : > { %v481_v13 = vpop.permute.xlu1 %480  ;;  %v617_v36 = vmax.f32 %v601_v21, 0.0 }
 0x255   : > { %v502_v57 = vmin.f32 %v481_v13, %v1968_v26  ;;  %v2408_v10 = vpop.permute.xlu0 %1004 }
 0x256   : > { %1138 = vperm.xlu1 %1552, %v1093_v7   ;;  %v2652_v7 = vmov 0.0  }
 0x257   : > { %v602_v58 = vsub.f32 %v502_v57, %v2649_v20  ;;  %263 = vst [vmem:[%s2424_s24] sm:$0x1] %v2652_v7  ;;  %264 = vst [vmem:[%s2429_s11] sm:$0x1] %v2652_v7 }
 0x259   : > { %v681_v59 = vpop.permute.xlu1 %680  ;;  %v618_v12 = vmax.f32 %v602_v58, 0.0  ;;  %v291_v58 = vsel %vm290_vm13, %v1983_v49, %v289_v31 }
 0x25a   : > { %v702_v37 = vmin.f32 %v681_v59, %v1972_v28  ;;  %1141 = vperm.xlu1 %1552, %v1094_v15   ;;  %v2413_v28 = vpop.permute.xlu0 %1012 }
 0x25c   : > { %v802_v26 = vsub.f32 %v702_v37, %v786_v42 }
 0x25e   : > { %v818_v62 = vmax.f32 %v802_v26, 0.0  ;;  %v753_v63 = vpop.permute.xlu1 %752  ;;  %v2420_v13 = vpop.permute.xlu0 %1016 }
 0x25f   : > { %v783_v23 = vmax.f32 %v753_v63, %v1974_v33 }
 0x260   : > { %v2397_v27 = vmul.f32 %v818_v62, %v618_v12  ;;  %v292_v12 = vrot.slane %v291_v58, 2 }
 0x261   : > { %v799_v32 = vsub.f32 %v2650_v3, %v783_v23 }
 0x262   : > { %v761_v39 = vpop.permute.xlu1 %760  ;;  %v2439_v23 = vpop.permute.xlu0 %1028  ;;  %vm293_vm15 = vcmp.lt.s32.totalorder %v291_v58, %v292_v12 }
 0x263   : > { %v815_v50 = vmax.f32 %v799_v32, 0.0  ;;  %v785_v41 = vmax.f32 %v761_v39, %v1974_v33 }
 0x265   : > { %v831_v16 = vmul.f32 %v815_v50, %v615_v6  ;;  %v801_v60 = vsub.f32 %v2651_v61, %v785_v41  ;;  %v2446_v6 = vsel %vm310_vm14, 1.0, %v2652_v7  ;;  %v1223_v41 = vld [vmem:[%s2429_s11] sm:$0x1] }
 0x267   : > { %v931_v51 = vsub.f32 %v915_v30, %v831_v16  ;;  %v817_v5 = vmax.f32 %v801_v60, 0.0  ;;  %v837_v35 = vpop.permute.xlu1 %836 }
 0x268   : > { %v903_v38 = vadd.f32 %v1976_v40, %v837_v35 }
 0x269   : > { %v947_v11 = vmax.f32 %v931_v51, 1e-12  ;;  %v833_v18 = vmul.f32 %v817_v5, %v617_v36  ;;  %v294_v51 = vsel %vm293_vm15, %v291_v58, %v292_v12  ;;  %v2459_v5 = vpop.permute.xlu0 %1032 }
 0x26a   : > { %v919_v33 = vsub.f32 %v903_v38, %v2128_v47 }
 0x26b   : > { %1563 = vrcp.f32 %v947_v11  ;;  %v933_v48 = vsub.f32 %v917_v17, %v833_v18  ;;  %v845_v19 = vpop.permute.xlu1 %844 }
 0x26c   : > { %v935_v45 = vmax.f32 %v919_v33, 1e-12  ;;  %v905_v54 = vadd.f32 %v1976_v40, %v845_v19 }
 0x26d   : > { %v949_v52 = vmax.f32 %v933_v48, 1e-12 }
 0x26e   : > { %1565 = vrcp.f32 %v935_v45  ;;  %v921_v24 = vsub.f32 %v905_v54, %v2194_v0 }
 0x26f   : > { %1567 = vrcp.f32 %v949_v52  ;;  %v849_v25 = vpop.permute.xlu1 %848 }
 0x270   : > { %v937_v21 = vmax.f32 %v921_v24, 1e-12  ;;  %v906_v29 = vadd.f32 %v1976_v40, %v849_v25 }
 0x272   : > { %1569 = vrcp.f32 %v937_v21  ;;  %v922_v57 = vsub.f32 %v906_v29, %v2220_v4 }
 0x273   : > { %v857_v20 = vpop.permute.xlu1 %856 }
 0x274   : > { %v938_v59 = vmax.f32 %v922_v57, 1e-12  ;;  %v908_v15 = vadd.f32 %v1976_v40, %v857_v20 }
 0x275   : > { %v1564_v42 = vpop.eup %1563 }
 0x276   : > { %1571 = vrcp.f32 %v938_v59  ;;  %v924_v37 = vsub.f32 %v908_v15, %v2264_v8  ;;  %v2436_v26 = vmul.f32 %v1564_v42, %v831_v16  ;;  %v1224_v16 = vadd.f32 %v2446_v6, %v1223_v41 }
 0x277   : > { %v865_v62 = vpop.permute.xlu1 %864 }
 0x278   : > { %v1566_v63 = vpop.eup %1565  ;;  %v940_v3 = vmax.f32 %v924_v37, 1e-12  ;;  %v910_v49 = vadd.f32 %v1976_v40, %v865_v62  ;;  %1225 = vst [vmem:[%s2429_s11] sm:$0x1] %v1224_v16 }
 0x279   : > { %v1568_v32 = vpop.eup %1567  ;;  %v2443_v39 = vmul.f32 %v1566_v63, %v2128_v47 }
 0x27a   : > { %1573 = vrcp.f32 %v940_v3  ;;  %v926_v50 = vsub.f32 %v910_v49, %v2293_v53  ;;  %v2449_v44 = vmul.f32 %v1568_v32, %v833_v18  ;;  %v295_v18 = vrot.slane %v294_v51, 1 }
 0x27b   : > { %v873_v30 = vpop.permute.xlu1 %872 }
 0x27c   : > { %v1570_v61 = vpop.eup %1569  ;;  %v942_v60 = vmax.f32 %v926_v50, 1e-12  ;;  %v912_v47 = vadd.f32 %v1976_v40, %v873_v30 }
 0x27d   : > { %v2456_v36 = vmul.f32 %v1570_v61, %v2194_v0 }
 0x27e   : > { %1575 = vrcp.f32 %v942_v60  ;;  %v928_v35 = vsub.f32 %v912_v47, %v2320_v43 }
 0x27f   : > { %v881_v38 = vpop.permute.xlu1 %880 }
 0x280   : > { %v1572_v17 = vpop.eup %1571  ;;  %v944_v11 = vmax.f32 %v928_v35, 1e-12  ;;  %v914_v0 = vadd.f32 %v1976_v40, %v881_v38 }
 0x281   : > { %v2474_v33 = vmul.f32 %v1572_v17, %v2220_v4 }
 0x282   : > { %1658 = shalt.err (!%p1655_p2)
}
 0x283   : > { %s1659_s10 = scalar_lea.hbm %s2467_s7, 16  ;;  %s1663_s22 = scalar_lea.hbm %s2631_s3, 32 }
 0x284   : > { %p1660_p9 = scmp.ne.s32.totalorder %s2467_s7, %s1659_s10  ;;  %p1664_p6 = scmp.lt.u32.totalorder %s2467_s7, %s2631_s3 }
 0x285   : > { %p1665_p13 = scmp.lt.u32.totalorder %s1663_s22, %s1659_s10  ;;  %p1667_p8 = scmp.lt.u32.totalorder %s1659_s10, %s2467_s7 }
 0x286   : > { %p1661_p11 = pnand %p1660_p9, %p2653_p0 }
 0x287   : > { %p1666_p5 = por %p1665_p13, %p1664_p6 }
 0x288   : > { %p1662_p3 = pneg %p1661_p11 }
 0x289   : > { %p1668_p7 = por %p1667_p8, %p1666_p5 }
 0x28b   : > { %p1669_p4 = pnand %p1668_p7, %p1662_p3 }
 0x28d   : > { %1672 = shalt.err (!%p1669_p4)
}
 0x28e   : > { %1408 = dma.vmem_to_hbm [thread:$0]  (%p2653_p0), %s2471_s18, 16, %s2467_s7, %s1231_s28   ;;  %1577 = vrcp.f32 %v944_v11  ;;  %v930_v4 = vsub.f32 %v914_v0, %v2351_v14  ;;  %v889_v48 = vpop.permute.xlu1 %888  ;;  %v1574_v19 = vpop.eup %1573  ;;  %vm296_vm0 = vcmp.lt.s32.totalorder %v294_v51, %v295_v18 }
 0x28f   : > { %v2499_v45 = vpop.permute.xlu0 %1044  ;;  %v916_v31 = vadd.f32 %v1976_v40, %v889_v48  ;;  %v2503_v52 = vmul.f32 %v1574_v19, %v2264_v8  ;;  %v1576_v21 = vpop.eup %1575  ;;  %v297_v29 = vsel %vm296_vm0, %v294_v51, %v295_v18  ;;  %s1243_s30 = sshll.u32 %s2424_s24, 4  ;;  %s2578_s28 = scalar_lea.hbm %s2630_s2, %s1399_s4  ;;  %s2580_s30 = int_to_ptr.vmem [resolvable:$true] %s1243_s30 }
 0x290   : > { %v946_v54 = vmax.f32 %v930_v4, 1e-12  ;;  %v2508_v20 = vmul.f32 %v1576_v21, %v2293_v53  ;;  %v2511_v15 = vcvt.s32.f32 %v297_v29  ;;  %s1227_s29 = scalar_lea.sflag [#allocation5], %s1951_s23  ;;  %s1673_s19 = scalar_lea.vmem %s2580_s30, 16 }
 0x291   : > { %v932_v24 = vsub.f32 %v916_v31, %v2374_v46  ;;  %p1674_p10 = scmp.ne.s32.totalorder %s2580_s30, %s1673_s19  ;;  %s1776_s21 = smov [#allocation8]  }
 0x292   : > { %1579 = vrcp.f32 %v946_v54  ;;  %v897_v25 = vpop.permute.xlu1 %896  ;;  %vm1047_vm11 = vcmp.eq.f32.partialorder %v2391_v22, %v2511_v15  ;;  %vm1050_vm0 = vcmp.eq.f32.partialorder %v2395_v1, %v2511_v15  ;;  %s1677_s8 = sshll.u32 %s1776_s21, 4  ;;  %s1678_s8 = int_to_ptr.vmem [resolvable:$false] %s1677_s8 }
 0x293   : > { %v948_v57 = vmax.f32 %v932_v24, 1e-12  ;;  %v918_v7 = vadd.f32 %v1976_v40, %v897_v25  ;;  %v1100_v58 = vpop.permute.xlu0 %1099  ;;  %p1675_p12 = pnand %p1674_p10, %p2653_p0  ;;  %s1679_s15 = scalar_lea.vmem %s1678_s8, 32 }
 0x294   : > { %vm1144_vm1 = vcmp.eq.s32.totalorder %v1100_v58, 1  ;;  %p1680_p2 = scmp.lt.s32.totalorder %s2580_s30, %s1678_s8  ;;  %p1681_p9 = scmp.lt.s32.totalorder %s1679_s15, %s1673_s19 }
 0x295   : > { %1581 = vrcp.f32 %v948_v57  ;;  %v934_v59 = vsub.f32 %v918_v7, %v2397_v27  ;;  %p1676_p1 = pneg %p1675_p12 }
 0x296   : > { %v989_v37 = vpop.permute.xlu1 %988  ;;  %p1682_p11 = por %p1681_p9, %p1680_p2 }
 0x297   : > { %v950_v42 = vmax.f32 %v934_v59, 1e-12  ;;  %vm1048_vm2 = vcmp.eq.f32.partialorder %v989_v37, %v2511_v15  ;;  %v1109_v63 = vpop.permute.xlu0 %1108 }
 0x298   : > { %v1578_v8 = vpop.eup %1577  ;;  %vm2515_vm3 = vmand %vm1048_vm2, %vm1144_vm1  ;;  %vm1147_vm5 = vcmp.eq.s32.totalorder %v1109_v63, 1  ;;  %p1683_p3 = pnand %p1682_p11, %p1676_p1 }
 0x299   : > { %v976_v12 = vmul.f32 %v1578_v8, %v2320_v43  ;;  %1583 = vrcp.f32 %v950_v42  ;;  %v1176_v53 = vsel %vm2515_vm3, %v2278_v55, 0.0  ;;  %vm1052_vm3 = vcmp.eq.f32.partialorder %v2408_v10, %v2511_v15 }
 0x29a   : > { %v993_v3 = vpop.permute.xlu1 %992 }
 0x29b   : > { %vm1049_vm4 = vcmp.eq.f32.partialorder %v993_v3, %v2511_v15  ;;  %v1115_v41 = vpop.permute.xlu0 %1114  ;;  %v1212_v3 = vld [vmem:[#allocation2] sm:$0x1] }
 0x29c   : > { %v1580_v62 = vpop.eup %1579  ;;  %vm1149_vm8 = vcmp.eq.s32.totalorder %v1115_v41, 1 }
 0x29d   : > { %v2524_v49 = vmul.f32 %v1580_v62, %v2351_v14 }
 0x29e   : > { %v1001_v50 = vpop.permute.xlu1 %1000 }
 0x29f   : > { %v1582_v32 = vpop.eup %1581  ;;  %vm1051_vm6 = vcmp.eq.f32.partialorder %v1001_v50, %v2511_v15  ;;  %v1124_v1 = vpop.permute.xlu0 %1123 }
 0x2a0   : > { %v2528_v43 = vmul.f32 %v1582_v32, %v2374_v46  ;;  %vm1163_vm7 = vmand %vm1051_vm6, %vm1147_vm5  ;;  %v1220_v32 = vld [vmem:[%s2424_s24] sm:$0x1] }
 0x2a1   : > { %v1179_v55 = vsel %vm1163_vm7, %v2282_v34, 0.0 }
 0x2a2   : > { %v1009_v16 = vpop.permute.xlu1 %1008 }
 0x2a3   : > { %v1584_v30 = vpop.eup %1583  ;;  %vm1053_vm9 = vcmp.eq.f32.partialorder %v1009_v16, %v2511_v15 }
 0x2a4   : > { %v2533_v14 = vmul.f32 %v1584_v30, %v2397_v27  ;;  %vm1165_vm10 = vmand %vm1053_vm9, %vm1149_vm8  ;;  %vm1152_vm9 = vcmp.eq.s32.totalorder %v1124_v1, 1 }
 0x2a5   : > { %v1181_v61 = vsel %vm1165_vm10, %v2295_v56, 0.0 }
 0x2a6   : > { %v1097_v60 = vpop.permute.xlu1 %1096 }
 0x2a7   : > { %vm1143_vm12 = vcmp.eq.s32.totalorder %v1097_v60, 1 }
 0x2a8   : > { %vm1159_vm13 = vmand %vm1047_vm11, %vm1143_vm12  ;;  %vm1055_vm12 = vcmp.eq.f32.partialorder %v2420_v13, %v2511_v15  ;;  %v1136_v13 = vpop.permute.xlu0 %1135 }
 0x2a9   : > { %v1175_v46 = vsel %vm1159_vm13, %v2443_v39, 0.0 }
 0x2aa   : > { %v1191_v34 = vmax.f32 %v1175_v46, %v1179_v55  ;;  %v1103_v47 = vpop.permute.xlu1 %1102 }
 0x2ab   : > { %vm1145_vm14 = vcmp.eq.s32.totalorder %v1103_v47, 1 }
 0x2ac   : > { %vm1161_vm15 = vmand %vm1049_vm4, %vm1145_vm14  ;;  %vm1054_vm4 = vcmp.eq.f32.partialorder %v2413_v28, %v2511_v15 }
 0x2ad   : > { %v1177_v27 = vsel %vm1161_vm15, %v2456_v36, 0.0 }
 0x2ae   : > { %v1193_v51 = vmax.f32 %v1177_v27, %v1181_v61  ;;  %v1106_v35 = vpop.permute.xlu1 %1105 }
 0x2af   : > { %vm1146_vm1 = vcmp.eq.s32.totalorder %v1106_v35, 1 }
 0x2b0   : > { %vm1162_vm2 = vmand %vm1050_vm0, %vm1146_vm1 }
 0x2b1   : > { %v1178_v56 = vsel %vm1162_vm2, %v2474_v33, 0.0  ;;  %vm1058_vm2 = vcmp.eq.f32.partialorder %v2439_v23, %v2511_v15 }
 0x2b2   : > { %v1112_v22 = vpop.permute.xlu1 %1111 }
 0x2b3   : > { %vm1148_vm5 = vcmp.eq.s32.totalorder %v1112_v22, 1 }
 0x2b4   : > { %vm1164_vm6 = vmand %vm1052_vm3, %vm1148_vm5 }
 0x2b5   : > { %v1180_v39 = vsel %vm1164_vm6, %v2503_v52, 0.0  ;;  %vm1156_vm6 = vcmp.eq.s32.totalorder %v1136_v13, 1 }
 0x2b6   : > { %v1192_v38 = vmax.f32 %v1176_v53, %v1180_v39  ;;  %v1118_v17 = vpop.permute.xlu1 %1117 }
 0x2b7   : > { %vm1150_vm7 = vcmp.eq.s32.totalorder %v1118_v17, 1 }
 0x2b8   : > { %vm1166_vm8 = vmand %vm1054_vm4, %vm1150_vm7 }
 0x2b9   : > { %v1182_v36 = vsel %vm1166_vm8, %v2508_v20, 0.0  ;;  %vm1059_vm8 = vcmp.eq.f32.partialorder %v2459_v5, %v2511_v15 }
 0x2ba   : > { %v1194_v11 = vmax.f32 %v1178_v56, %v1182_v36  ;;  %v1021_v0 = vpop.permute.xlu1 %1020 }
 0x2bb   : > { %vm1056_vm10 = vcmp.eq.f32.partialorder %v1021_v0, %v2511_v15 }
 0x2bc   : > { %vm1168_vm11 = vmand %vm1056_vm10, %vm1152_vm9 }
 0x2bd   : > { %v1184_v10 = vsel %vm1168_vm11, %v976_v12, 0.0 }
 0x2be   : > { %v1196_v18 = vmax.f32 %v1192_v38, %v1184_v10  ;;  %v1025_v33 = vpop.permute.xlu1 %1024 }
 0x2bf   : > { %vm1057_vm15 = vcmp.eq.f32.partialorder %v1025_v33, %v2511_v15 }
 0x2c2   : > { %v1121_v4 = vpop.permute.xlu1 %1120 }
 0x2c3   : > { %vm1151_vm13 = vcmp.eq.s32.totalorder %v1121_v4, 1 }
 0x2c4   : > { %vm1167_vm14 = vmand %vm1055_vm12, %vm1151_vm13 }
 0x2c5   : > { %v1183_v28 = vsel %vm1167_vm14, %v2324_v2, 0.0  ;;  %vm1062_vm14 = vcmp.eq.f32.partialorder %v2499_v45, %v2511_v15 }
 0x2c6   : > { %v1195_v48 = vmax.f32 %v1191_v34, %v1183_v28  ;;  %v1127_v19 = vpop.permute.xlu1 %1126 }
 0x2c7   : > { %vm1153_vm0 = vcmp.eq.s32.totalorder %v1127_v19, 1 }
 0x2c8   : > { %vm1169_vm1 = vmand %vm1057_vm15, %vm1153_vm0 }
 0x2c9   : > { %v1185_v54 = vsel %vm1169_vm1, %v2360_v9, 0.0 }
 0x2ca   : > { %v1197_v31 = vmax.f32 %v1193_v51, %v1185_v54  ;;  %v1130_v52 = vpop.permute.xlu1 %1129 }
 0x2cb   : > { %vm1154_vm3 = vcmp.eq.s32.totalorder %v1130_v52, 1 }
 0x2cc   : > { %vm1170_vm5 = vmand %vm1058_vm2, %vm1154_vm3 }
 0x2cd   : > { %v1186_v24 = vsel %vm1170_vm5, %v2524_v49, 0.0 }
 0x2ce   : > { %v1198_v25 = vmax.f32 %v1194_v11, %v1186_v24  ;;  %v1037_v2 = vpop.permute.xlu1 %1036 }
 0x2cf   : > { %vm1060_vm4 = vcmp.eq.f32.partialorder %v1037_v2, %v2511_v15 }
 0x2d0   : > { %vm1172_vm7 = vmand %vm1060_vm4, %vm1156_vm6 }
 0x2d1   : > { %v1188_v21 = vsel %vm1172_vm7, %v2528_v43, 0.0 }
 0x2d2   : > { %v1200_v29 = vmax.f32 %v1196_v18, %v1188_v21  ;;  %v1041_v9 = vpop.permute.xlu1 %1040 }
 0x2d3   : > { %vm1061_vm11 = vcmp.eq.f32.partialorder %v1041_v9, %v2511_v15 }
 0x2d6   : > { %v1133_v57 = vpop.permute.xlu1 %1132 }
 0x2d7   : > { %vm1155_vm9 = vcmp.eq.s32.totalorder %v1133_v57, 1 }
 0x2d8   : > { %vm1171_vm10 = vmand %vm1059_vm8, %vm1155_vm9 }
 0x2d9   : > { %v1187_v23 = vsel %vm1171_vm10, %v2436_v26, 0.0 }
 0x2da   : > { %v1199_v7 = vmax.f32 %v1195_v48, %v1187_v23  ;;  %v1139_v20 = vpop.permute.xlu1 %1138 }
 0x2db   : > { %vm1157_vm12 = vcmp.eq.s32.totalorder %v1139_v20, 1 }
 0x2dc   : > { %v1203_v58 = vmax.f32 %v1199_v7, %v1200_v29  ;;  %vm1173_vm13 = vmand %vm1061_vm11, %vm1157_vm12 }
 0x2dd   : > { %v1189_v59 = vsel %vm1173_vm13, %v2449_v44, 0.0 }
 0x2de   : > { %v1201_v8 = vmax.f32 %v1197_v31, %v1189_v59  ;;  %v1142_v42 = vpop.permute.xlu1 %1141 }
 0x2df   : > { %vm1158_vm15 = vcmp.eq.s32.totalorder %v1142_v42, 1 }
 0x2e0   : > { %vm1174_vm0 = vmand %vm1062_vm14, %vm1158_vm15 }
 0x2e1   : > { %v1190_v26 = vsel %vm1174_vm0, %v2533_v14, 0.0 }
 0x2e2   : > { %v1202_v5 = vmax.f32 %v1198_v25, %v1190_v26 }
 0x2e4   : > { %v1204_v37 = vmax.f32 %v1201_v8, %v1202_v5 }
 0x2e6   : > { %v1205_v12 = vmax.f32 %v1203_v58, %v1204_v37 }
 0x2e8   : > { %v1206_v40 = vrot.slane %v1205_v12, 4 }
 0x2ea   : > { %v1207_v53 = vmax.f32 %v1205_v12, %v1206_v40 }
 0x2ec   : > { %v1208_v44 = vrot.slane %v1207_v53, 2 }
 0x2ee   : > { %v1209_v62 = vmax.f32 %v1207_v53, %v1208_v44 }
 0x2f0   : > { %v1210_v63 = vrot.slane %v1209_v62, 1 }
 0x2f2   : > { %v1211_v45 = vmax.f32 %v1209_v62, %v1210_v63 }
 0x2f4   : > { %v1213_v15 = vmax.f32 %v1212_v3, %v1211_v45 }
 0x2f6   : > { %1214 = vst [vmem:[#allocation2] sm:$0x1] %v1213_v15 }
 0x2fd   : > { %v1218_v49 = vld [vmem:[#allocation2] sm:$0x1] }
 0x2fe   : > { %v1219_v50 = vmul.f32 %v2446_v6, %v1218_v49 }
 0x300   : > { %v1221_v43 = vadd.f32 %v1220_v32, %v1219_v50 }
 0x302   : > { %1222 = vst [vmem:[%s2424_s24] sm:$0x1] %v1221_v43 }
 0x303   : > { %1686 = shalt.err (!%p1683_p3)
}
 0x304   : > { %s1687_s23 = scalar_lea.hbm %s2578_s28, 16  ;;  %s1691_s10 = scalar_lea.hbm %s2630_s2, 32 }
 0x305   : > { %p1688_p6 = scmp.ne.s32.totalorder %s2578_s28, %s1687_s23  ;;  %p1692_p8 = scmp.lt.u32.totalorder %s2578_s28, %s2630_s2 }
 0x306   : > { %p1693_p7 = scmp.lt.u32.totalorder %s1691_s10, %s1687_s23  ;;  %p1695_p10 = scmp.lt.u32.totalorder %s1687_s23, %s2578_s28 }
 0x307   : > { %p1689_p13 = pnand %p1688_p6, %p2653_p0 }
 0x308   : > { %p1694_p4 = por %p1693_p7, %p1692_p8 }
 0x309   : > { %p1690_p5 = pneg %p1689_p13 }
 0x30a   : > { %p1696_p12 = por %p1695_p10, %p1694_p4 }
 0x30c   : > { %p1697_p1 = pnand %p1696_p12, %p1690_p5 }
 0x30e   : > { %1700 = shalt.err (!%p1697_p1)
}
 0x30f   : > { %1407 = dma.vmem_to_hbm [thread:$0]  (%p2653_p0), %s2580_s30, 16, %s2578_s28, %s1227_s29  }
 0x310 PF: > { %s1268_s22 = sand.u32 1, %s1743_s12   ;;  %p2656_p2 = scmp.ne.s32.totalorder %s2639_s27, 0 }
 0x311   : > { %p2657_p9 = scmp.ge.s32.totalorder %s1763_s17, 2  ;;  %s1269_s11 = scalar_lea.sflag [#allocation5], %s1268_s22 }
 0x313   : > { %p1419_p11 = pnand %p2657_p9, %p2656_p2 }
 0x315   : > { %1734 = dma.done.wait (!%p1419_p11), %s1269_s11, 16  }
 0x316   : > { %1736 = vsyncadd (!%p1419_p11), %s1269_s11, 4294967280  ;;  %s1277_s6 = scalar_lea.sflag [#allocation10], %s1268_s22 }
 0x317   : > { %1738 = dma.done.wait (!%p1419_p11), %s1277_s6, 16  }
 0x318   : > { %1740 = vsyncadd (!%p1419_p11), %s1277_s6, 4294967280  ;;  %s26_s17 = sadd.s32 1, %s1763_s17   ;;  %s2658_s12 = smov %s1747_s13 }
 0x319   : > { %p23_p3 = scmp.ge.s32.totalorder %s26_s17, 4   ;;  %s2659_s13 = smov %s1751_s14 }
 0x31a   : > { %s2660_s14 = smov %s1853_s26  ;;  %s2661_s15 = smov %s1759_s16 }
 0x31b   : > { %s2662_s16 = smov %s2664_s20  ;;  %25 = sbr.rel (!%p23_p3) target bundleno = 10 (0xa), region = 115 }
 0x322   :  { %1281 = vsyncpa [#allocation4], 1 }
 0x323   :  { %1283 = vsyncpa [#allocation4 + $0x1], 1 }
 0x324   :  { %1284 = vsyncpa [#allocation7], 1 }
 0x325   :  { %1286 = vsyncpa [#allocation7 + $0x1], 1 }
 0x326   :  { %1287 = vsyncpa [#allocation5], 1 }
 0x327   :  { %1289 = vsyncpa [#allocation5 + $0x1], 1 }
 0x328   :  { %1290 = vsyncpa [#allocation10], 1 }
 0x329   :  { %1292 = vsyncpa [#allocation10 + $0x1], 1 }

</bundles_post_ra>
